<compile_context>
chip_gen: v7x
topology: tpu7x:2x2x1
jax: 0.10.0
libtpu: 0.0.40
codegen_flags: <defaults>
</compile_context>

<pallas_src>
import functools

import jax
import jax.numpy as jnp
from jax import lax
from jax.experimental import pallas as pl
from jax.experimental.pallas import tpu as pltpu


def _rb_kernel(x_ref, w_ref, p_ref, o_ref, xpad_ref, ypad_ref, *,
               N, C, Cp, H, W, PAD, eps):
    HW = H * W

    # column coordinate of every flattened pixel (horizontal-border masks)
    wcoord = lax.broadcasted_iota(jnp.int32, (Cp, HW), 1) % W
    m_left = wcoord > 0          # valid positions when the tap reads column w-1
    m_right = wcoord < (W - 1)   # valid positions when the tap reads column w+1

    # packed per-channel params: [gamma1, beta1, gamma2, beta2, prelu_alpha]
    # (conv biases are omitted: exactly cancelled by the following InstanceNorm)
    g1 = p_ref[:, 0:1]
    be1 = p_ref[:, 1:2]
    g2 = p_ref[:, 2:3]
    be2 = p_ref[:, 3:4]
    alpha = p_ref[:, 4:5]

    w1 = w_ref[0]                # (Cp, 9*Cp)
    w2 = w_ref[1]

    def conv3x3(pad_ref, n, w_flat):
        # Build the (9*Cp, HW) stacked-shift operand from the flat-padded
        # source scratch, then do a single MXU matmul (K = 9*Cp).
        pieces = []
        for kh in range(3):
            for kw in range(3):
                d = (kh - 1) * W + (kw - 1)                 # flat tap offset
                s = pad_ref[n, :, PAD + d:PAD + d + HW]     # (Cp, HW)
                if kw == 0:
                    s = jnp.where(m_left, s, 0.0)
                elif kw == 2:
                    s = jnp.where(m_right, s, 0.0)
                pieces.append(s)
        stacked = jnp.concatenate(pieces, axis=0)           # (9*Cp, HW)
        return jnp.dot(w_flat, stacked, preferred_element_type=jnp.float32)

    def inst_norm(z, gamma, beta):
        # one-pass stats (two independent lane reductions) + fused affine
        mean = jnp.mean(z, axis=1, keepdims=True)
        mean_sq = jnp.mean(z * z, axis=1, keepdims=True)
        var = mean_sq - mean * mean
        scale = gamma * lax.rsqrt(var + eps)
        shift = beta - mean * scale
        return z * scale + shift

    zpad = jnp.zeros((Cp, PAD), jnp.float32)

    # Stage the (spatially unpadded) input into a flat-padded VMEM scratch;
    # the zero border lanes provide the conv's zero padding for free.  Single
    # grid step -> the border zeroing happens exactly once.
    for n in range(N):
        xpad_ref[n, :, :PAD] = zpad
        xpad_ref[n, :, PAD + HW:] = zpad
        xpad_ref[n, :, PAD:PAD + HW] = x_ref[n]
        ypad_ref[n, :, :PAD] = zpad
        ypad_ref[n, :, PAD + HW:] = zpad

    # conv1 -> IN -> PReLU  (batches statically unrolled: independent chains)
    for n in range(N):
        y = conv3x3(xpad_ref, n, w1)
        y = inst_norm(y, g1, be1)
        y = jnp.where(y >= 0, y, alpha * y)
        ypad_ref[n, :, PAD:PAD + HW] = y        # zero borders already in place

    # conv2 -> IN -> residual add
    for n in range(N):
        z = conv3x3(ypad_ref, n, w2)
        z = inst_norm(z, g2, be2)
        o_ref[n] = (z[:C, :] + x_ref[n, :C, :]).astype(o_ref.dtype)


def prepare_rb_params(params):
    """One-time packing of module parameters (hoisted out of the call path)."""
    w1, b1, g1, be1, a, w2, b2, g2, be2 = params
    del b1, b2  # conv biases are cancelled by the following InstanceNorm
    C = w1.shape[0]
    Cp = ((C + 7) // 8) * 8      # pad channels to the f32 sublane multiple

    # (C_out, C_in, 3, 3) -> zero-padded (Cp, Cp, 3, 3) -> (Cp, 9*Cp),
    # tap-major (k = kh*3+kw, then c_in) to match the in-kernel stacking order.
    def flat_w(w):
        wp = jnp.zeros((Cp, Cp, 3, 3), jnp.float32).at[:C, :C].set(
            w.astype(jnp.float32))
        return jnp.transpose(wp, (0, 2, 3, 1)).reshape(Cp, 9 * Cp)

    wpk = jnp.stack([flat_w(w1), flat_w(w2)], axis=0)        # (2, Cp, 9*Cp)

    alpha_c = jnp.broadcast_to(jnp.asarray(a, jnp.float32), (C,))
    cols = jnp.stack([g1, be1, g2, be2, alpha_c], axis=1).astype(jnp.float32)
    # lane-dense (Cp, 128) tile: avoids a sub-128-lane masked DMA
    p = jnp.zeros((Cp, 128), jnp.float32).at[:C, :5].set(cols)
    return wpk, p


def rb_forward(x, wpk, p, *, eps=1e-5, pad=128):
    N, C, H, W = x.shape
    HW = H * W
    Cp = wpk.shape[1]
    PAD = pad
    assert PAD >= W + 1, "flat pad must cover a full row shift plus one column"
    assert wpk.shape == (2, Cp, 9 * Cp) and p.shape == (Cp, 128)

    # rough VMEM budget check (single-step kernel, everything resident)
    vmem_bytes = 4 * (2 * N * Cp * (HW + 2 * PAD)    # padded scratches
                      + N * Cp * HW + N * C * HW     # in / out blocks
                      + 2 * Cp * 9 * Cp + Cp * 128   # weights + params
                      + 2 * 9 * Cp * HW)             # stacked conv operands
    # TODO(synk): for large n_feats / H*W (v7x has 64 MiB VMEM) tile the
    # spatial axis with a halo'd grid instead of one resident block per sample.
    assert vmem_bytes < 24 * 1024 * 1024, "tile spatially for this problem size"

    # lane-dense flattened activations; channel-pad to Cp (zero rows).
    xf = x.reshape(N, C, HW).astype(jnp.float32)
    if Cp > C:
        xf = jnp.pad(xf, ((0, 0), (0, Cp - C), (0, 0)))

    kernel = functools.partial(_rb_kernel, N=N, C=C, Cp=Cp, H=H, W=W,
                               PAD=PAD, eps=eps)

    out = pl.pallas_call(
        kernel,
        out_shape=jax.ShapeDtypeStruct((N, C, HW), x.dtype),
        grid_spec=pltpu.PrefetchScalarGridSpec(
            num_scalar_prefetch=0,
            grid=(1,),                                        # batch folded
            in_specs=[
                pl.BlockSpec((N, Cp, HW), lambda i: (0, 0, 0)),       # x
                pl.BlockSpec((2, Cp, 9 * Cp), lambda i: (0, 0, 0)),   # weights
                pl.BlockSpec((Cp, 128), lambda i: (0, 0)),            # params
            ],
            out_specs=pl.BlockSpec((N, C, HW), lambda i: (0, 0, 0)),
            scratch_shapes=[
                pltpu.VMEM((N, Cp, HW + 2 * PAD), jnp.float32),  # padded x
                pltpu.VMEM((N, Cp, HW + 2 * PAD), jnp.float32),  # padded y
            ],
        ),
        compiler_params=pltpu.CompilerParams(
            dimension_semantics=("arbitrary",)),
    )(xf, wpk, p)

    return out.reshape(N, C, H, W)


def rb_reference(x, params):
    """Pure-JAX reference of the PyTorch RB forward (for correctness check)."""
    w1, b1, g1, be1, a, w2, b2, g2, be2 = params

    def conv(y, w, b):
        out = lax.conv_general_dilated(
            y, w, window_strides=(1, 1), padding=((1, 1), (1, 1)),
            dimension_numbers=('NCHW', 'OIHW', 'NCHW'))
        return out + b[None, :, None, None]

    def inorm(y, g, be):
        m = jnp.mean(y, axis=(2, 3), keepdims=True)
        v = jnp.mean((y - m) ** 2, axis=(2, 3), keepdims=True)
        return (y - m) / jnp.sqrt(v + 1e-5) * g[None, :, None, None] \
            + be[None, :, None, None]

    y = conv(x, w1, b1)
    y = inorm(y, g1, be1)
    y = jnp.where(y >= 0, y, a * y)
    y = conv(y, w2, b2)
    y = inorm(y, g2, be2)
    return y + x


if __name__ == "__main__":
    key = jax.random.PRNGKey(0)
    N, C, H, W = 2, 4, 16, 16   # n_feats = 4
    ks = jax.random.split(key, 8)

    x = jax.random.normal(ks[0], (N, C, H, W), jnp.float32)

    fan = C * 9
    w1 = jax.random.normal(ks[1], (C, C, 3, 3), jnp.float32) / jnp.sqrt(fan)
    b1 = 0.1 * jax.random.normal(ks[2], (C,), jnp.float32)
    w2 = jax.random.normal(ks[3], (C, C, 3, 3), jnp.float32) / jnp.sqrt(fan)
    b2 = 0.1 * jax.random.normal(ks[4], (C,), jnp.float32)
    # InstanceNorm2d(affine=True) params (perturbed so the affine path is live)
    g1 = 1.0 + 0.1 * jax.random.normal(ks[5], (C,), jnp.float32)
    be1 = 0.1 * jax.random.normal(ks[6], (C,), jnp.float32)
    g2 = jnp.ones((C,), jnp.float32)
    be2 = jnp.zeros((C,), jnp.float32)
    a = jnp.array(0.25, jnp.float32)   # PReLU default init (single parameter)

    params = (w1, b1, g1, be1, a, w2, b2, g2, be2)

    # one-time parameter packing (hoisted out of the per-call path)
    wpk, p = prepare_rb_params(params)

    fwd = jax.jit(rb_forward)
    out = jax.block_until_ready(fwd(x, wpk, p))

    ref = rb_reference(x, params)
    err = float(jnp.max(jnp.abs(out - ref)))
    assert out.shape == x.shape, f"bad shape {out.shape}"
    assert err < 1e-3, f"mismatch vs reference: max abs err = {err}"
    print("KERNEL_OK")
</pallas_src>

<mosaic_0001>
module attributes {stable_mosaic.version = 11 : i64} {
  func.func @_rb_kernel(%arg0: i32, %arg1: memref<2x8x256xf32, #tpu.memory_space<vmem>>, %arg2: memref<2x8x72xf32, #tpu.memory_space<vmem>>, %arg3: memref<8x128xf32, #tpu.memory_space<vmem>>, %arg4: memref<2x4x256xf32, #tpu.memory_space<vmem>>, %arg5: memref<2x8x512xf32, #tpu.memory_space<vmem>>, %arg6: memref<2x8x512xf32, #tpu.memory_space<vmem>>) attributes {dimension_semantics = [#tpu.dimension_semantics<arbitrary>], iteration_bounds = array<i64: 1>, scalar_prefetch = 0 : i64, scratch_operands = 2 : i64, tpu.core_type = #tpu.core_type<tc>, window_params = [{pipeline_mode = #tpu.pipeline_mode<synchronous>, transform_indices = @transform_0, window_bounds = array<i64: 2, 8, 256>}, {pipeline_mode = #tpu.pipeline_mode<synchronous>, transform_indices = @transform_1, window_bounds = array<i64: 2, 8, 72>}, {pipeline_mode = #tpu.pipeline_mode<synchronous>, transform_indices = @transform_2, window_bounds = array<i64: 8, 128>}, {pipeline_mode = #tpu.pipeline_mode<synchronous>, transform_indices = @transform_3, window_bounds = array<i64: 2, 4, 256>}]} {
    %0 = tpu.iota {dimensions = array<i32: 1>} : vector<8x256xi32>
    %c16_i32 = arith.constant 16 : i32
    %c0_i32 = arith.constant 0 : i32
    %1 = arith.cmpi eq, %c16_i32, %c0_i32 : i32
    %c1_i32 = arith.constant 1 : i32
    %2 = arith.select %1, %c1_i32, %c16_i32 : i32
    %3 = vector.broadcast %2 : i32 to vector<8x256xi32>
    %4 = arith.remsi %0, %3 : vector<8x256xi32>
    %c0_i32_0 = arith.constant 0 : i32
    %5 = vector.broadcast %c0_i32_0 : i32 to vector<8x256xi32>
    %6 = arith.cmpi ne, %4, %5 : vector<8x256xi32>
    %c0_i32_1 = arith.constant 0 : i32
    %7 = vector.broadcast %c0_i32_1 : i32 to vector<8x256xi32>
    %8 = arith.cmpi slt, %4, %7 : vector<8x256xi32>
    %c0_i32_2 = arith.constant 0 : i32
    %9 = arith.cmpi slt, %2, %c0_i32_2 : i32
    %10 = vector.broadcast %9 : i1 to vector<8x256xi1>
    %11 = vector.broadcast %10 : vector<8x256xi1> to vector<8x256xi1>
    %12 = arith.xori %8, %11 : vector<8x256xi1>
    %13 = arith.andi %12, %6 : vector<8x256xi1>
    %14 = vector.broadcast %2 : i32 to vector<8x256xi32>
    %15 = arith.addi %4, %14 : vector<8x256xi32>
    %16 = arith.select %13, %15, %4 : vector<8x256xi1>, vector<8x256xi32>
    %c0_i32_3 = arith.constant 0 : i32
    %17 = vector.broadcast %c0_i32_3 : i32 to vector<8x256xi32>
    %18 = arith.cmpi sgt, %16, %17 : vector<8x256xi32>
    %c15_i32 = arith.constant 15 : i32
    %19 = vector.broadcast %c15_i32 : i32 to vector<8x256xi32>
    %20 = arith.cmpi slt, %16, %19 : vector<8x256xi32>
    %c0 = arith.constant 0 : index
    %c0_4 = arith.constant 0 : index
    %21 = vector.load %arg3[%c0, %c0_4] : memref<8x128xf32, #tpu.memory_space<vmem>>, vector<8x1xf32>
    %c0_5 = arith.constant 0 : index
    %c1 = arith.constant 1 : index
    %22 = vector.load %arg3[%c0_5, %c1] : memref<8x128xf32, #tpu.memory_space<vmem>>, vector<8x1xf32>
    %c0_6 = arith.constant 0 : index
    %c2 = arith.constant 2 : index
    %23 = vector.load %arg3[%c0_6, %c2] : memref<8x128xf32, #tpu.memory_space<vmem>>, vector<8x1xf32>
    %c0_7 = arith.constant 0 : index
    %c3 = arith.constant 3 : index
    %24 = vector.load %arg3[%c0_7, %c3] : memref<8x128xf32, #tpu.memory_space<vmem>>, vector<8x1xf32>
    %c0_8 = arith.constant 0 : index
    %c4 = arith.constant 4 : index
    %25 = vector.load %arg3[%c0_8, %c4] : memref<8x128xf32, #tpu.memory_space<vmem>>, vector<8x1xf32>
    %c0_9 = arith.constant 0 : index
    %c0_10 = arith.constant 0 : index
    %c0_11 = arith.constant 0 : index
    %26 = vector.load %arg2[%c0_9, %c0_10, %c0_11] : memref<2x8x72xf32, #tpu.memory_space<vmem>>, vector<1x8x72xf32>
    %27 = vector.shape_cast %26 : vector<1x8x72xf32> to vector<8x72xf32>
    %c1_12 = arith.constant 1 : index
    %c0_13 = arith.constant 0 : index
    %c0_14 = arith.constant 0 : index
    %28 = vector.load %arg2[%c1_12, %c0_13, %c0_14] : memref<2x8x72xf32, #tpu.memory_space<vmem>>, vector<1x8x72xf32>
    %29 = vector.shape_cast %28 : vector<1x8x72xf32> to vector<8x72xf32>
    %cst = arith.constant 0.000000e+00 : f32
    %30 = vector.broadcast %cst : f32 to vector<8x128xf32>
    %c0_15 = arith.constant 0 : index
    %c0_16 = arith.constant 0 : index
    %c0_17 = arith.constant 0 : index
    %31 = vector.load %arg5[%c0_15, %c0_16, %c0_17] : memref<2x8x512xf32, #tpu.memory_space<vmem>>, vector<1x8x128xf32>
    %32 = vector.shape_cast %31 : vector<1x8x128xf32> to vector<8x128xf32>
    %33 = vector.shape_cast %30 : vector<8x128xf32> to vector<1x8x128xf32>
    tpu.vector_store %arg5[%c0_15, %c0_16, %c0_17], %33 {strides = array<i32>} : memref<2x8x512xf32, #tpu.memory_space<vmem>>, vector<1x8x128xf32>,
    %c0_18 = arith.constant 0 : index
    %c0_19 = arith.constant 0 : index
    %c384 = arith.constant 384 : index
    %34 = vector.load %arg5[%c0_18, %c0_19, %c384] : memref<2x8x512xf32, #tpu.memory_space<vmem>>, vector<1x8x128xf32>
    %35 = vector.shape_cast %34 : vector<1x8x128xf32> to vector<8x128xf32>
    %36 = vector.shape_cast %30 : vector<8x128xf32> to vector<1x8x128xf32>
    tpu.vector_store %arg5[%c0_18, %c0_19, %c384], %36 {strides = array<i32>} : memref<2x8x512xf32, #tpu.memory_space<vmem>>, vector<1x8x128xf32>,
    %c0_20 = arith.constant 0 : index
    %c0_21 = arith.constant 0 : index
    %c0_22 = arith.constant 0 : index
    %37 = vector.load %arg1[%c0_20, %c0_21, %c0_22] : memref<2x8x256xf32, #tpu.memory_space<vmem>>, vector<1x8x256xf32>
    %38 = vector.shape_cast %37 : vector<1x8x256xf32> to vector<8x256xf32>
    %c0_23 = arith.constant 0 : index
    %c0_24 = arith.constant 0 : index
    %c128 = arith.constant 128 : index
    %39 = vector.load %arg5[%c0_23, %c0_24, %c128] : memref<2x8x512xf32, #tpu.memory_space<vmem>>, vector<1x8x256xf32>
    %40 = vector.shape_cast %39 : vector<1x8x256xf32> to vector<8x256xf32>
    %41 = vector.shape_cast %38 : vector<8x256xf32> to vector<1x8x256xf32>
    tpu.vector_store %arg5[%c0_23, %c0_24, %c128], %41 {strides = array<i32>} : memref<2x8x512xf32, #tpu.memory_space<vmem>>, vector<1x8x256xf32>,
    %c0_25 = arith.constant 0 : index
    %c0_26 = arith.constant 0 : index
    %c0_27 = arith.constant 0 : index
    %42 = vector.load %arg6[%c0_25, %c0_26, %c0_27] : memref<2x8x512xf32, #tpu.memory_space<vmem>>, vector<1x8x128xf32>
    %43 = vector.shape_cast %42 : vector<1x8x128xf32> to vector<8x128xf32>
    %44 = vector.shape_cast %30 : vector<8x128xf32> to vector<1x8x128xf32>
    tpu.vector_store %arg6[%c0_25, %c0_26, %c0_27], %44 {strides = array<i32>} : memref<2x8x512xf32, #tpu.memory_space<vmem>>, vector<1x8x128xf32>,
    %c0_28 = arith.constant 0 : index
    %c0_29 = arith.constant 0 : index
    %c384_30 = arith.constant 384 : index
    %45 = vector.load %arg6[%c0_28, %c0_29, %c384_30] : memref<2x8x512xf32, #tpu.memory_space<vmem>>, vector<1x8x128xf32>
    %46 = vector.shape_cast %45 : vector<1x8x128xf32> to vector<8x128xf32>
    %47 = vector.shape_cast %30 : vector<8x128xf32> to vector<1x8x128xf32>
    tpu.vector_store %arg6[%c0_28, %c0_29, %c384_30], %47 {strides = array<i32>} : memref<2x8x512xf32, #tpu.memory_space<vmem>>, vector<1x8x128xf32>,
    %c1_31 = arith.constant 1 : index
    %c0_32 = arith.constant 0 : index
    %c0_33 = arith.constant 0 : index
    %48 = vector.load %arg5[%c1_31, %c0_32, %c0_33] : memref<2x8x512xf32, #tpu.memory_space<vmem>>, vector<1x8x128xf32>
    %49 = vector.shape_cast %48 : vector<1x8x128xf32> to vector<8x128xf32>
    %50 = vector.shape_cast %30 : vector<8x128xf32> to vector<1x8x128xf32>
    tpu.vector_store %arg5[%c1_31, %c0_32, %c0_33], %50 {strides = array<i32>} : memref<2x8x512xf32, #tpu.memory_space<vmem>>, vector<1x8x128xf32>,
    %c1_34 = arith.constant 1 : index
    %c0_35 = arith.constant 0 : index
    %c384_36 = arith.constant 384 : index
    %51 = vector.load %arg5[%c1_34, %c0_35, %c384_36] : memref<2x8x512xf32, #tpu.memory_space<vmem>>, vector<1x8x128xf32>
    %52 = vector.shape_cast %51 : vector<1x8x128xf32> to vector<8x128xf32>
    %53 = vector.shape_cast %30 : vector<8x128xf32> to vector<1x8x128xf32>
    tpu.vector_store %arg5[%c1_34, %c0_35, %c384_36], %53 {strides = array<i32>} : memref<2x8x512xf32, #tpu.memory_space<vmem>>, vector<1x8x128xf32>,
    %c1_37 = arith.constant 1 : index
    %c0_38 = arith.constant 0 : index
    %c0_39 = arith.constant 0 : index
    %54 = vector.load %arg1[%c1_37, %c0_38, %c0_39] : memref<2x8x256xf32, #tpu.memory_space<vmem>>, vector<1x8x256xf32>
    %55 = vector.shape_cast %54 : vector<1x8x256xf32> to vector<8x256xf32>
    %c1_40 = arith.constant 1 : index
    %c0_41 = arith.constant 0 : index
    %c128_42 = arith.constant 128 : index
    %56 = vector.load %arg5[%c1_40, %c0_41, %c128_42] : memref<2x8x512xf32, #tpu.memory_space<vmem>>, vector<1x8x256xf32>
    %57 = vector.shape_cast %56 : vector<1x8x256xf32> to vector<8x256xf32>
    %58 = vector.shape_cast %55 : vector<8x256xf32> to vector<1x8x256xf32>
    tpu.vector_store %arg5[%c1_40, %c0_41, %c128_42], %58 {strides = array<i32>} : memref<2x8x512xf32, #tpu.memory_space<vmem>>, vector<1x8x256xf32>,
    %c1_43 = arith.constant 1 : index
    %c0_44 = arith.constant 0 : index
    %c0_45 = arith.constant 0 : index
    %59 = vector.load %arg6[%c1_43, %c0_44, %c0_45] : memref<2x8x512xf32, #tpu.memory_space<vmem>>, vector<1x8x128xf32>
    %60 = vector.shape_cast %59 : vector<1x8x128xf32> to vector<8x128xf32>
    %61 = vector.shape_cast %30 : vector<8x128xf32> to vector<1x8x128xf32>
    tpu.vector_store %arg6[%c1_43, %c0_44, %c0_45], %61 {strides = array<i32>} : memref<2x8x512xf32, #tpu.memory_space<vmem>>, vector<1x8x128xf32>,
    %c1_46 = arith.constant 1 : index
    %c0_47 = arith.constant 0 : index
    %c384_48 = arith.constant 384 : index
    %62 = vector.load %arg6[%c1_46, %c0_47, %c384_48] : memref<2x8x512xf32, #tpu.memory_space<vmem>>, vector<1x8x128xf32>
    %63 = vector.shape_cast %62 : vector<1x8x128xf32> to vector<8x128xf32>
    %64 = vector.shape_cast %30 : vector<8x128xf32> to vector<1x8x128xf32>
    tpu.vector_store %arg6[%c1_46, %c0_47, %c384_48], %64 {strides = array<i32>} : memref<2x8x512xf32, #tpu.memory_space<vmem>>, vector<1x8x128xf32>,
    %c0_49 = arith.constant 0 : index
    %c0_50 = arith.constant 0 : index
    %c111 = arith.constant 111 : index
    %65 = vector.load %arg5[%c0_49, %c0_50, %c111] : memref<2x8x512xf32, #tpu.memory_space<vmem>>, vector<1x8x256xf32>
    %66 = vector.shape_cast %65 : vector<1x8x256xf32> to vector<8x256xf32>
    %cst_51 = arith.constant 0.000000e+00 : f32
    %67 = vector.broadcast %cst_51 : f32 to vector<8x256xf32>
    %68 = arith.select %18, %66, %67 : vector<8x256xi1>, vector<8x256xf32>
    %c0_52 = arith.constant 0 : index
    %c0_53 = arith.constant 0 : index
    %c112 = arith.constant 112 : index
    %69 = vector.load %arg5[%c0_52, %c0_53, %c112] : memref<2x8x512xf32, #tpu.memory_space<vmem>>, vector<1x8x256xf32>
    %70 = vector.shape_cast %69 : vector<1x8x256xf32> to vector<8x256xf32>
    %c0_54 = arith.constant 0 : index
    %c0_55 = arith.constant 0 : index
    %c113 = arith.constant 113 : index
    %71 = vector.load %arg5[%c0_54, %c0_55, %c113] : memref<2x8x512xf32, #tpu.memory_space<vmem>>, vector<1x8x256xf32>
    %72 = vector.shape_cast %71 : vector<1x8x256xf32> to vector<8x256xf32>
    %cst_56 = arith.constant 0.000000e+00 : f32
    %73 = vector.broadcast %cst_56 : f32 to vector<8x256xf32>
    %74 = arith.select %20, %72, %73 : vector<8x256xi1>, vector<8x256xf32>
    %c0_57 = arith.constant 0 : index
    %c0_58 = arith.constant 0 : index
    %c127 = arith.constant 127 : index
    %75 = vector.load %arg5[%c0_57, %c0_58, %c127] : memref<2x8x512xf32, #tpu.memory_space<vmem>>, vector<1x8x256xf32>
    %76 = vector.shape_cast %75 : vector<1x8x256xf32> to vector<8x256xf32>
    %cst_59 = arith.constant 0.000000e+00 : f32
    %77 = vector.broadcast %cst_59 : f32 to vector<8x256xf32>
    %78 = arith.select %18, %76, %77 : vector<8x256xi1>, vector<8x256xf32>
    %c0_60 = arith.constant 0 : index
    %c0_61 = arith.constant 0 : index
    %c128_62 = arith.constant 128 : index
    %79 = vector.load %arg5[%c0_60, %c0_61, %c128_62] : memref<2x8x512xf32, #tpu.memory_space<vmem>>, vector<1x8x256xf32>
    %80 = vector.shape_cast %79 : vector<1x8x256xf32> to vector<8x256xf32>
    %c0_63 = arith.constant 0 : index
    %c0_64 = arith.constant 0 : index
    %c129 = arith.constant 129 : index
    %81 = vector.load %arg5[%c0_63, %c0_64, %c129] : memref<2x8x512xf32, #tpu.memory_space<vmem>>, vector<1x8x256xf32>
    %82 = vector.shape_cast %81 : vector<1x8x256xf32> to vector<8x256xf32>
    %cst_65 = arith.constant 0.000000e+00 : f32
    %83 = vector.broadcast %cst_65 : f32 to vector<8x256xf32>
    %84 = arith.select %20, %82, %83 : vector<8x256xi1>, vector<8x256xf32>
    %c0_66 = arith.constant 0 : index
    %c0_67 = arith.constant 0 : index
    %c143 = arith.constant 143 : index
    %85 = vector.load %arg5[%c0_66, %c0_67, %c143] : memref<2x8x512xf32, #tpu.memory_space<vmem>>, vector<1x8x256xf32>
    %86 = vector.shape_cast %85 : vector<1x8x256xf32> to vector<8x256xf32>
    %cst_68 = arith.constant 0.000000e+00 : f32
    %87 = vector.broadcast %cst_68 : f32 to vector<8x256xf32>
    %88 = arith.select %18, %86, %87 : vector<8x256xi1>, vector<8x256xf32>
    %c0_69 = arith.constant 0 : index
    %c0_70 = arith.constant 0 : index
    %c144 = arith.constant 144 : index
    %89 = vector.load %arg5[%c0_69, %c0_70, %c144] : memref<2x8x512xf32, #tpu.memory_space<vmem>>, vector<1x8x256xf32>
    %90 = vector.shape_cast %89 : vector<1x8x256xf32> to vector<8x256xf32>
    %c0_71 = arith.constant 0 : index
    %c0_72 = arith.constant 0 : index
    %c145 = arith.constant 145 : index
    %91 = vector.load %arg5[%c0_71, %c0_72, %c145] : memref<2x8x512xf32, #tpu.memory_space<vmem>>, vector<1x8x256xf32>
    %92 = vector.shape_cast %91 : vector<1x8x256xf32> to vector<8x256xf32>
    %cst_73 = arith.constant 0.000000e+00 : f32
    %93 = vector.broadcast %cst_73 : f32 to vector<8x256xf32>
    %94 = arith.select %20, %92, %93 : vector<8x256xi1>, vector<8x256xf32>
    %95 = tpu.concatenate %68, %70, %74, %78, %80, %84, %88, %90, %94 in 0 : vector<8x256xf32>, vector<8x256xf32>, vector<8x256xf32>, vector<8x256xf32>, vector<8x256xf32>, vector<8x256xf32>, vector<8x256xf32>, vector<8x256xf32>, vector<8x256xf32> -> vector<72x256xf32>
    %cst_74 = arith.constant dense<0.000000e+00> : vector<8x256xf32>
    %96 = tpu.matmul %27, %95, %cst_74 {dimension_numbers = #tpu.dot_dimension_numbers<[1], [0], [0], [1], [0, 0, 1, 1], [], []>} : vector<8x72xf32>, vector<72x256xf32>, vector<8x256xf32> -> vector<8x256xf32>
    %cst_75 = arith.constant dense<0.000000e+00> : vector<8xf32>
    %97 = vector.multi_reduction <add>, %96, %cst_75 [1] : vector<8x256xf32> to vector<8xf32>
    %98 = vector.shape_cast %97 : vector<8xf32> to vector<8x1xf32>
    %cst_76 = arith.constant 2.560000e+02 : f32
    %99 = vector.broadcast %cst_76 : f32 to vector<8x1xf32>
    %100 = arith.divf %98, %99 : vector<8x1xf32>
    %101 = arith.mulf %96, %96 : vector<8x256xf32>
    %cst_77 = arith.constant dense<0.000000e+00> : vector<8xf32>
    %102 = vector.multi_reduction <add>, %101, %cst_77 [1] : vector<8x256xf32> to vector<8xf32>
    %103 = vector.shape_cast %102 : vector<8xf32> to vector<8x1xf32>
    %cst_78 = arith.constant 2.560000e+02 : f32
    %104 = vector.broadcast %cst_78 : f32 to vector<8x1xf32>
    %105 = arith.divf %103, %104 : vector<8x1xf32>
    %106 = arith.mulf %100, %100 : vector<8x1xf32>
    %107 = arith.subf %105, %106 : vector<8x1xf32>
    %cst_79 = arith.constant 9.99999974E-6 : f32
    %108 = vector.broadcast %cst_79 : f32 to vector<8x1xf32>
    %109 = arith.addf %107, %108 : vector<8x1xf32>
    %110 = math.rsqrt %109 : vector<8x1xf32>
    %111 = arith.mulf %21, %110 : vector<8x1xf32>
    %112 = arith.mulf %100, %111 : vector<8x1xf32>
    %113 = arith.subf %22, %112 : vector<8x1xf32>
    %114 = vector.broadcast %111 : vector<8x1xf32> to vector<8x256xf32>
    %115 = arith.mulf %96, %114 : vector<8x256xf32>
    %116 = vector.broadcast %113 : vector<8x1xf32> to vector<8x256xf32>
    %117 = arith.addf %115, %116 : vector<8x256xf32>
    %cst_80 = arith.constant 0.000000e+00 : f32
    %118 = vector.broadcast %cst_80 : f32 to vector<8x256xf32>
    %119 = arith.cmpf oge, %117, %118 : vector<8x256xf32>
    %120 = vector.broadcast %25 : vector<8x1xf32> to vector<8x256xf32>
    %121 = arith.mulf %120, %117 : vector<8x256xf32>
    %122 = arith.select %119, %117, %121 : vector<8x256xi1>, vector<8x256xf32>
    %c0_81 = arith.constant 0 : index
    %c0_82 = arith.constant 0 : index
    %c128_83 = arith.constant 128 : index
    %123 = vector.load %arg6[%c0_81, %c0_82, %c128_83] : memref<2x8x512xf32, #tpu.memory_space<vmem>>, vector<1x8x256xf32>
    %124 = vector.shape_cast %123 : vector<1x8x256xf32> to vector<8x256xf32>
    %125 = vector.shape_cast %122 : vector<8x256xf32> to vector<1x8x256xf32>
    tpu.vector_store %arg6[%c0_81, %c0_82, %c128_83], %125 {strides = array<i32>} : memref<2x8x512xf32, #tpu.memory_space<vmem>>, vector<1x8x256xf32>,
    %c1_84 = arith.constant 1 : index
    %c0_85 = arith.constant 0 : index
    %c111_86 = arith.constant 111 : index
    %126 = vector.load %arg5[%c1_84, %c0_85, %c111_86] : memref<2x8x512xf32, #tpu.memory_space<vmem>>, vector<1x8x256xf32>
    %127 = vector.shape_cast %126 : vector<1x8x256xf32> to vector<8x256xf32>
    %cst_87 = arith.constant 0.000000e+00 : f32
    %128 = vector.broadcast %cst_87 : f32 to vector<8x256xf32>
    %129 = arith.select %18, %127, %128 : vector<8x256xi1>, vector<8x256xf32>
    %c1_88 = arith.constant 1 : index
    %c0_89 = arith.constant 0 : index
    %c112_90 = arith.constant 112 : index
    %130 = vector.load %arg5[%c1_88, %c0_89, %c112_90] : memref<2x8x512xf32, #tpu.memory_space<vmem>>, vector<1x8x256xf32>
    %131 = vector.shape_cast %130 : vector<1x8x256xf32> to vector<8x256xf32>
    %c1_91 = arith.constant 1 : index
    %c0_92 = arith.constant 0 : index
    %c113_93 = arith.constant 113 : index
    %132 = vector.load %arg5[%c1_91, %c0_92, %c113_93] : memref<2x8x512xf32, #tpu.memory_space<vmem>>, vector<1x8x256xf32>
    %133 = vector.shape_cast %132 : vector<1x8x256xf32> to vector<8x256xf32>
    %cst_94 = arith.constant 0.000000e+00 : f32
    %134 = vector.broadcast %cst_94 : f32 to vector<8x256xf32>
    %135 = arith.select %20, %133, %134 : vector<8x256xi1>, vector<8x256xf32>
    %c1_95 = arith.constant 1 : index
    %c0_96 = arith.constant 0 : index
    %c127_97 = arith.constant 127 : index
    %136 = vector.load %arg5[%c1_95, %c0_96, %c127_97] : memref<2x8x512xf32, #tpu.memory_space<vmem>>, vector<1x8x256xf32>
    %137 = vector.shape_cast %136 : vector<1x8x256xf32> to vector<8x256xf32>
    %cst_98 = arith.constant 0.000000e+00 : f32
    %138 = vector.broadcast %cst_98 : f32 to vector<8x256xf32>
    %139 = arith.select %18, %137, %138 : vector<8x256xi1>, vector<8x256xf32>
    %c1_99 = arith.constant 1 : index
    %c0_100 = arith.constant 0 : index
    %c128_101 = arith.constant 128 : index
    %140 = vector.load %arg5[%c1_99, %c0_100, %c128_101] : memref<2x8x512xf32, #tpu.memory_space<vmem>>, vector<1x8x256xf32>
    %141 = vector.shape_cast %140 : vector<1x8x256xf32> to vector<8x256xf32>
    %c1_102 = arith.constant 1 : index
    %c0_103 = arith.constant 0 : index
    %c129_104 = arith.constant 129 : index
    %142 = vector.load %arg5[%c1_102, %c0_103, %c129_104] : memref<2x8x512xf32, #tpu.memory_space<vmem>>, vector<1x8x256xf32>
    %143 = vector.shape_cast %142 : vector<1x8x256xf32> to vector<8x256xf32>
    %cst_105 = arith.constant 0.000000e+00 : f32
    %144 = vector.broadcast %cst_105 : f32 to vector<8x256xf32>
    %145 = arith.select %20, %143, %144 : vector<8x256xi1>, vector<8x256xf32>
    %c1_106 = arith.constant 1 : index
    %c0_107 = arith.constant 0 : index
    %c143_108 = arith.constant 143 : index
    %146 = vector.load %arg5[%c1_106, %c0_107, %c143_108] : memref<2x8x512xf32, #tpu.memory_space<vmem>>, vector<1x8x256xf32>
    %147 = vector.shape_cast %146 : vector<1x8x256xf32> to vector<8x256xf32>
    %cst_109 = arith.constant 0.000000e+00 : f32
    %148 = vector.broadcast %cst_109 : f32 to vector<8x256xf32>
    %149 = arith.select %18, %147, %148 : vector<8x256xi1>, vector<8x256xf32>
    %c1_110 = arith.constant 1 : index
    %c0_111 = arith.constant 0 : index
    %c144_112 = arith.constant 144 : index
    %150 = vector.load %arg5[%c1_110, %c0_111, %c144_112] : memref<2x8x512xf32, #tpu.memory_space<vmem>>, vector<1x8x256xf32>
    %151 = vector.shape_cast %150 : vector<1x8x256xf32> to vector<8x256xf32>
    %c1_113 = arith.constant 1 : index
    %c0_114 = arith.constant 0 : index
    %c145_115 = arith.constant 145 : index
    %152 = vector.load %arg5[%c1_113, %c0_114, %c145_115] : memref<2x8x512xf32, #tpu.memory_space<vmem>>, vector<1x8x256xf32>
    %153 = vector.shape_cast %152 : vector<1x8x256xf32> to vector<8x256xf32>
    %cst_116 = arith.constant 0.000000e+00 : f32
    %154 = vector.broadcast %cst_116 : f32 to vector<8x256xf32>
    %155 = arith.select %20, %153, %154 : vector<8x256xi1>, vector<8x256xf32>
    %156 = tpu.concatenate %129, %131, %135, %139, %141, %145, %149, %151, %155 in 0 : vector<8x256xf32>, vector<8x256xf32>, vector<8x256xf32>, vector<8x256xf32>, vector<8x256xf32>, vector<8x256xf32>, vector<8x256xf32>, vector<8x256xf32>, vector<8x256xf32> -> vector<72x256xf32>
    %cst_117 = arith.constant dense<0.000000e+00> : vector<8x256xf32>
    %157 = tpu.matmul %27, %156, %cst_117 {dimension_numbers = #tpu.dot_dimension_numbers<[1], [0], [0], [1], [0, 0, 1, 1], [], []>} : vector<8x72xf32>, vector<72x256xf32>, vector<8x256xf32> -> vector<8x256xf32>
    %cst_118 = arith.constant dense<0.000000e+00> : vector<8xf32>
    %158 = vector.multi_reduction <add>, %157, %cst_118 [1] : vector<8x256xf32> to vector<8xf32>
    %159 = vector.shape_cast %158 : vector<8xf32> to vector<8x1xf32>
    %cst_119 = arith.constant 2.560000e+02 : f32
    %160 = vector.broadcast %cst_119 : f32 to vector<8x1xf32>
    %161 = arith.divf %159, %160 : vector<8x1xf32>
    %162 = arith.mulf %157, %157 : vector<8x256xf32>
    %cst_120 = arith.constant dense<0.000000e+00> : vector<8xf32>
    %163 = vector.multi_reduction <add>, %162, %cst_120 [1] : vector<8x256xf32> to vector<8xf32>
    %164 = vector.shape_cast %163 : vector<8xf32> to vector<8x1xf32>
    %cst_121 = arith.constant 2.560000e+02 : f32
    %165 = vector.broadcast %cst_121 : f32 to vector<8x1xf32>
    %166 = arith.divf %164, %165 : vector<8x1xf32>
    %167 = arith.mulf %161, %161 : vector<8x1xf32>
    %168 = arith.subf %166, %167 : vector<8x1xf32>
    %cst_122 = arith.constant 9.99999974E-6 : f32
    %169 = vector.broadcast %cst_122 : f32 to vector<8x1xf32>
    %170 = arith.addf %168, %169 : vector<8x1xf32>
    %171 = math.rsqrt %170 : vector<8x1xf32>
    %172 = arith.mulf %21, %171 : vector<8x1xf32>
    %173 = arith.mulf %161, %172 : vector<8x1xf32>
    %174 = arith.subf %22, %173 : vector<8x1xf32>
    %175 = vector.broadcast %172 : vector<8x1xf32> to vector<8x256xf32>
    %176 = arith.mulf %157, %175 : vector<8x256xf32>
    %177 = vector.broadcast %174 : vector<8x1xf32> to vector<8x256xf32>
    %178 = arith.addf %176, %177 : vector<8x256xf32>
    %cst_123 = arith.constant 0.000000e+00 : f32
    %179 = vector.broadcast %cst_123 : f32 to vector<8x256xf32>
    %180 = arith.cmpf oge, %178, %179 : vector<8x256xf32>
    %181 = vector.broadcast %25 : vector<8x1xf32> to vector<8x256xf32>
    %182 = arith.mulf %181, %178 : vector<8x256xf32>
    %183 = arith.select %180, %178, %182 : vector<8x256xi1>, vector<8x256xf32>
    %c1_124 = arith.constant 1 : index
    %c0_125 = arith.constant 0 : index
    %c128_126 = arith.constant 128 : index
    %184 = vector.load %arg6[%c1_124, %c0_125, %c128_126] : memref<2x8x512xf32, #tpu.memory_space<vmem>>, vector<1x8x256xf32>
    %185 = vector.shape_cast %184 : vector<1x8x256xf32> to vector<8x256xf32>
    %186 = vector.shape_cast %183 : vector<8x256xf32> to vector<1x8x256xf32>
    tpu.vector_store %arg6[%c1_124, %c0_125, %c128_126], %186 {strides = array<i32>} : memref<2x8x512xf32, #tpu.memory_space<vmem>>, vector<1x8x256xf32>,
    %c0_127 = arith.constant 0 : index
    %c0_128 = arith.constant 0 : index
    %c111_129 = arith.constant 111 : index
    %187 = vector.load %arg6[%c0_127, %c0_128, %c111_129] : memref<2x8x512xf32, #tpu.memory_space<vmem>>, vector<1x8x256xf32>
    %188 = vector.shape_cast %187 : vector<1x8x256xf32> to vector<8x256xf32>
    %cst_130 = arith.constant 0.000000e+00 : f32
    %189 = vector.broadcast %cst_130 : f32 to vector<8x256xf32>
    %190 = arith.select %18, %188, %189 : vector<8x256xi1>, vector<8x256xf32>
    %c0_131 = arith.constant 0 : index
    %c0_132 = arith.constant 0 : index
    %c112_133 = arith.constant 112 : index
    %191 = vector.load %arg6[%c0_131, %c0_132, %c112_133] : memref<2x8x512xf32, #tpu.memory_space<vmem>>, vector<1x8x256xf32>
    %192 = vector.shape_cast %191 : vector<1x8x256xf32> to vector<8x256xf32>
    %c0_134 = arith.constant 0 : index
    %c0_135 = arith.constant 0 : index
    %c113_136 = arith.constant 113 : index
    %193 = vector.load %arg6[%c0_134, %c0_135, %c113_136] : memref<2x8x512xf32, #tpu.memory_space<vmem>>, vector<1x8x256xf32>
    %194 = vector.shape_cast %193 : vector<1x8x256xf32> to vector<8x256xf32>
    %cst_137 = arith.constant 0.000000e+00 : f32
    %195 = vector.broadcast %cst_137 : f32 to vector<8x256xf32>
    %196 = arith.select %20, %194, %195 : vector<8x256xi1>, vector<8x256xf32>
    %c0_138 = arith.constant 0 : index
    %c0_139 = arith.constant 0 : index
    %c127_140 = arith.constant 127 : index
    %197 = vector.load %arg6[%c0_138, %c0_139, %c127_140] : memref<2x8x512xf32, #tpu.memory_space<vmem>>, vector<1x8x256xf32>
    %198 = vector.shape_cast %197 : vector<1x8x256xf32> to vector<8x256xf32>
    %cst_141 = arith.constant 0.000000e+00 : f32
    %199 = vector.broadcast %cst_141 : f32 to vector<8x256xf32>
    %200 = arith.select %18, %198, %199 : vector<8x256xi1>, vector<8x256xf32>
    %c0_142 = arith.constant 0 : index
    %c0_143 = arith.constant 0 : index
    %c128_144 = arith.constant 128 : index
    %201 = vector.load %arg6[%c0_142, %c0_143, %c128_144] : memref<2x8x512xf32, #tpu.memory_space<vmem>>, vector<1x8x256xf32>
    %202 = vector.shape_cast %201 : vector<1x8x256xf32> to vector<8x256xf32>
    %c0_145 = arith.constant 0 : index
    %c0_146 = arith.constant 0 : index
    %c129_147 = arith.constant 129 : index
    %203 = vector.load %arg6[%c0_145, %c0_146, %c129_147] : memref<2x8x512xf32, #tpu.memory_space<vmem>>, vector<1x8x256xf32>
    %204 = vector.shape_cast %203 : vector<1x8x256xf32> to vector<8x256xf32>
    %cst_148 = arith.constant 0.000000e+00 : f32
    %205 = vector.broadcast %cst_148 : f32 to vector<8x256xf32>
    %206 = arith.select %20, %204, %205 : vector<8x256xi1>, vector<8x256xf32>
    %c0_149 = arith.constant 0 : index
    %c0_150 = arith.constant 0 : index
    %c143_151 = arith.constant 143 : index
    %207 = vector.load %arg6[%c0_149, %c0_150, %c143_151] : memref<2x8x512xf32, #tpu.memory_space<vmem>>, vector<1x8x256xf32>
    %208 = vector.shape_cast %207 : vector<1x8x256xf32> to vector<8x256xf32>
    %cst_152 = arith.constant 0.000000e+00 : f32
    %209 = vector.broadcast %cst_152 : f32 to vector<8x256xf32>
    %210 = arith.select %18, %208, %209 : vector<8x256xi1>, vector<8x256xf32>
    %c0_153 = arith.constant 0 : index
    %c0_154 = arith.constant 0 : index
    %c144_155 = arith.constant 144 : index
    %211 = vector.load %arg6[%c0_153, %c0_154, %c144_155] : memref<2x8x512xf32, #tpu.memory_space<vmem>>, vector<1x8x256xf32>
    %212 = vector.shape_cast %211 : vector<1x8x256xf32> to vector<8x256xf32>
    %c0_156 = arith.constant 0 : index
    %c0_157 = arith.constant 0 : index
    %c145_158 = arith.constant 145 : index
    %213 = vector.load %arg6[%c0_156, %c0_157, %c145_158] : memref<2x8x512xf32, #tpu.memory_space<vmem>>, vector<1x8x256xf32>
    %214 = vector.shape_cast %213 : vector<1x8x256xf32> to vector<8x256xf32>
    %cst_159 = arith.constant 0.000000e+00 : f32
    %215 = vector.broadcast %cst_159 : f32 to vector<8x256xf32>
    %216 = arith.select %20, %214, %215 : vector<8x256xi1>, vector<8x256xf32>
    %217 = tpu.concatenate %190, %192, %196, %200, %202, %206, %210, %212, %216 in 0 : vector<8x256xf32>, vector<8x256xf32>, vector<8x256xf32>, vector<8x256xf32>, vector<8x256xf32>, vector<8x256xf32>, vector<8x256xf32>, vector<8x256xf32>, vector<8x256xf32> -> vector<72x256xf32>
    %cst_160 = arith.constant dense<0.000000e+00> : vector<8x256xf32>
    %218 = tpu.matmul %29, %217, %cst_160 {dimension_numbers = #tpu.dot_dimension_numbers<[1], [0], [0], [1], [0, 0, 1, 1], [], []>} : vector<8x72xf32>, vector<72x256xf32>, vector<8x256xf32> -> vector<8x256xf32>
    %cst_161 = arith.constant dense<0.000000e+00> : vector<8xf32>
    %219 = vector.multi_reduction <add>, %218, %cst_161 [1] : vector<8x256xf32> to vector<8xf32>
    %220 = vector.shape_cast %219 : vector<8xf32> to vector<8x1xf32>
    %cst_162 = arith.constant 2.560000e+02 : f32
    %221 = vector.broadcast %cst_162 : f32 to vector<8x1xf32>
    %222 = arith.divf %220, %221 : vector<8x1xf32>
    %223 = arith.mulf %218, %218 : vector<8x256xf32>
    %cst_163 = arith.constant dense<0.000000e+00> : vector<8xf32>
    %224 = vector.multi_reduction <add>, %223, %cst_163 [1] : vector<8x256xf32> to vector<8xf32>
    %225 = vector.shape_cast %224 : vector<8xf32> to vector<8x1xf32>
    %cst_164 = arith.constant 2.560000e+02 : f32
    %226 = vector.broadcast %cst_164 : f32 to vector<8x1xf32>
    %227 = arith.divf %225, %226 : vector<8x1xf32>
    %228 = arith.mulf %222, %222 : vector<8x1xf32>
    %229 = arith.subf %227, %228 : vector<8x1xf32>
    %cst_165 = arith.constant 9.99999974E-6 : f32
    %230 = vector.broadcast %cst_165 : f32 to vector<8x1xf32>
    %231 = arith.addf %229, %230 : vector<8x1xf32>
    %232 = math.rsqrt %231 : vector<8x1xf32>
    %233 = arith.mulf %23, %232 : vector<8x1xf32>
    %234 = arith.mulf %222, %233 : vector<8x1xf32>
    %235 = arith.subf %24, %234 : vector<8x1xf32>
    %236 = vector.broadcast %233 : vector<8x1xf32> to vector<8x256xf32>
    %237 = arith.mulf %218, %236 : vector<8x256xf32>
    %238 = vector.broadcast %235 : vector<8x1xf32> to vector<8x256xf32>
    %239 = arith.addf %237, %238 : vector<8x256xf32>
    %240 = vector.extract_strided_slice %239 {offsets = [0, 0], sizes = [4, 256], strides = [1, 1]} : vector<8x256xf32> to vector<4x256xf32>
    %c0_166 = arith.constant 0 : index
    %c0_167 = arith.constant 0 : index
    %c0_168 = arith.constant 0 : index
    %241 = vector.load %arg1[%c0_166, %c0_167, %c0_168] : memref<2x8x256xf32, #tpu.memory_space<vmem>>, vector<1x4x256xf32>
    %242 = vector.shape_cast %241 : vector<1x4x256xf32> to vector<4x256xf32>
    %243 = arith.addf %240, %242 : vector<4x256xf32>
    %c0_169 = arith.constant 0 : index
    %c0_170 = arith.constant 0 : index
    %c0_171 = arith.constant 0 : index
    %244 = vector.load %arg4[%c0_169, %c0_170, %c0_171] : memref<2x4x256xf32, #tpu.memory_space<vmem>>, vector<1x4x256xf32>
    %245 = vector.shape_cast %244 : vector<1x4x256xf32> to vector<4x256xf32>
    %246 = vector.shape_cast %243 : vector<4x256xf32> to vector<1x4x256xf32>
    tpu.vector_store %arg4[%c0_169, %c0_170, %c0_171], %246 {strides = array<i32>} : memref<2x4x256xf32, #tpu.memory_space<vmem>>, vector<1x4x256xf32>,
    %c1_172 = arith.constant 1 : index
    %c0_173 = arith.constant 0 : index
    %c111_174 = arith.constant 111 : index
    %247 = vector.load %arg6[%c1_172, %c0_173, %c111_174] : memref<2x8x512xf32, #tpu.memory_space<vmem>>, vector<1x8x256xf32>
    %248 = vector.shape_cast %247 : vector<1x8x256xf32> to vector<8x256xf32>
    %cst_175 = arith.constant 0.000000e+00 : f32
    %249 = vector.broadcast %cst_175 : f32 to vector<8x256xf32>
    %250 = arith.select %18, %248, %249 : vector<8x256xi1>, vector<8x256xf32>
    %c1_176 = arith.constant 1 : index
    %c0_177 = arith.constant 0 : index
    %c112_178 = arith.constant 112 : index
    %251 = vector.load %arg6[%c1_176, %c0_177, %c112_178] : memref<2x8x512xf32, #tpu.memory_space<vmem>>, vector<1x8x256xf32>
    %252 = vector.shape_cast %251 : vector<1x8x256xf32> to vector<8x256xf32>
    %c1_179 = arith.constant 1 : index
    %c0_180 = arith.constant 0 : index
    %c113_181 = arith.constant 113 : index
    %253 = vector.load %arg6[%c1_179, %c0_180, %c113_181] : memref<2x8x512xf32, #tpu.memory_space<vmem>>, vector<1x8x256xf32>
    %254 = vector.shape_cast %253 : vector<1x8x256xf32> to vector<8x256xf32>
    %cst_182 = arith.constant 0.000000e+00 : f32
    %255 = vector.broadcast %cst_182 : f32 to vector<8x256xf32>
    %256 = arith.select %20, %254, %255 : vector<8x256xi1>, vector<8x256xf32>
    %c1_183 = arith.constant 1 : index
    %c0_184 = arith.constant 0 : index
    %c127_185 = arith.constant 127 : index
    %257 = vector.load %arg6[%c1_183, %c0_184, %c127_185] : memref<2x8x512xf32, #tpu.memory_space<vmem>>, vector<1x8x256xf32>
    %258 = vector.shape_cast %257 : vector<1x8x256xf32> to vector<8x256xf32>
    %cst_186 = arith.constant 0.000000e+00 : f32
    %259 = vector.broadcast %cst_186 : f32 to vector<8x256xf32>
    %260 = arith.select %18, %258, %259 : vector<8x256xi1>, vector<8x256xf32>
    %c1_187 = arith.constant 1 : index
    %c0_188 = arith.constant 0 : index
    %c128_189 = arith.constant 128 : index
    %261 = vector.load %arg6[%c1_187, %c0_188, %c128_189] : memref<2x8x512xf32, #tpu.memory_space<vmem>>, vector<1x8x256xf32>
    %262 = vector.shape_cast %261 : vector<1x8x256xf32> to vector<8x256xf32>
    %c1_190 = arith.constant 1 : index
    %c0_191 = arith.constant 0 : index
    %c129_192 = arith.constant 129 : index
    %263 = vector.load %arg6[%c1_190, %c0_191, %c129_192] : memref<2x8x512xf32, #tpu.memory_space<vmem>>, vector<1x8x256xf32>
    %264 = vector.shape_cast %263 : vector<1x8x256xf32> to vector<8x256xf32>
    %cst_193 = arith.constant 0.000000e+00 : f32
    %265 = vector.broadcast %cst_193 : f32 to vector<8x256xf32>
    %266 = arith.select %20, %264, %265 : vector<8x256xi1>, vector<8x256xf32>
    %c1_194 = arith.constant 1 : index
    %c0_195 = arith.constant 0 : index
    %c143_196 = arith.constant 143 : index
    %267 = vector.load %arg6[%c1_194, %c0_195, %c143_196] : memref<2x8x512xf32, #tpu.memory_space<vmem>>, vector<1x8x256xf32>
    %268 = vector.shape_cast %267 : vector<1x8x256xf32> to vector<8x256xf32>
    %cst_197 = arith.constant 0.000000e+00 : f32
    %269 = vector.broadcast %cst_197 : f32 to vector<8x256xf32>
    %270 = arith.select %18, %268, %269 : vector<8x256xi1>, vector<8x256xf32>
    %c1_198 = arith.constant 1 : index
    %c0_199 = arith.constant 0 : index
    %c144_200 = arith.constant 144 : index
    %271 = vector.load %arg6[%c1_198, %c0_199, %c144_200] : memref<2x8x512xf32, #tpu.memory_space<vmem>>, vector<1x8x256xf32>
    %272 = vector.shape_cast %271 : vector<1x8x256xf32> to vector<8x256xf32>
    %c1_201 = arith.constant 1 : index
    %c0_202 = arith.constant 0 : index
    %c145_203 = arith.constant 145 : index
    %273 = vector.load %arg6[%c1_201, %c0_202, %c145_203] : memref<2x8x512xf32, #tpu.memory_space<vmem>>, vector<1x8x256xf32>
    %274 = vector.shape_cast %273 : vector<1x8x256xf32> to vector<8x256xf32>
    %cst_204 = arith.constant 0.000000e+00 : f32
    %275 = vector.broadcast %cst_204 : f32 to vector<8x256xf32>
    %276 = arith.select %20, %274, %275 : vector<8x256xi1>, vector<8x256xf32>
    %277 = tpu.concatenate %250, %252, %256, %260, %262, %266, %270, %272, %276 in 0 : vector<8x256xf32>, vector<8x256xf32>, vector<8x256xf32>, vector<8x256xf32>, vector<8x256xf32>, vector<8x256xf32>, vector<8x256xf32>, vector<8x256xf32>, vector<8x256xf32> -> vector<72x256xf32>
    %cst_205 = arith.constant dense<0.000000e+00> : vector<8x256xf32>
    %278 = tpu.matmul %29, %277, %cst_205 {dimension_numbers = #tpu.dot_dimension_numbers<[1], [0], [0], [1], [0, 0, 1, 1], [], []>} : vector<8x72xf32>, vector<72x256xf32>, vector<8x256xf32> -> vector<8x256xf32>
    %cst_206 = arith.constant dense<0.000000e+00> : vector<8xf32>
    %279 = vector.multi_reduction <add>, %278, %cst_206 [1] : vector<8x256xf32> to vector<8xf32>
    %280 = vector.shape_cast %279 : vector<8xf32> to vector<8x1xf32>
    %cst_207 = arith.constant 2.560000e+02 : f32
    %281 = vector.broadcast %cst_207 : f32 to vector<8x1xf32>
    %282 = arith.divf %280, %281 : vector<8x1xf32>
    %283 = arith.mulf %278, %278 : vector<8x256xf32>
    %cst_208 = arith.constant dense<0.000000e+00> : vector<8xf32>
    %284 = vector.multi_reduction <add>, %283, %cst_208 [1] : vector<8x256xf32> to vector<8xf32>
    %285 = vector.shape_cast %284 : vector<8xf32> to vector<8x1xf32>
    %cst_209 = arith.constant 2.560000e+02 : f32
    %286 = vector.broadcast %cst_209 : f32 to vector<8x1xf32>
    %287 = arith.divf %285, %286 : vector<8x1xf32>
    %288 = arith.mulf %282, %282 : vector<8x1xf32>
    %289 = arith.subf %287, %288 : vector<8x1xf32>
    %cst_210 = arith.constant 9.99999974E-6 : f32
    %290 = vector.broadcast %cst_210 : f32 to vector<8x1xf32>
    %291 = arith.addf %289, %290 : vector<8x1xf32>
    %292 = math.rsqrt %291 : vector<8x1xf32>
    %293 = arith.mulf %23, %292 : vector<8x1xf32>
    %294 = arith.mulf %282, %293 : vector<8x1xf32>
    %295 = arith.subf %24, %294 : vector<8x1xf32>
    %296 = vector.broadcast %293 : vector<8x1xf32> to vector<8x256xf32>
    %297 = arith.mulf %278, %296 : vector<8x256xf32>
    %298 = vector.broadcast %295 : vector<8x1xf32> to vector<8x256xf32>
    %299 = arith.addf %297, %298 : vector<8x256xf32>
    %300 = vector.extract_strided_slice %299 {offsets = [0, 0], sizes = [4, 256], strides = [1, 1]} : vector<8x256xf32> to vector<4x256xf32>
    %c1_211 = arith.constant 1 : index
    %c0_212 = arith.constant 0 : index
    %c0_213 = arith.constant 0 : index
    %301 = vector.load %arg1[%c1_211, %c0_212, %c0_213] : memref<2x8x256xf32, #tpu.memory_space<vmem>>, vector<1x4x256xf32>
    %302 = vector.shape_cast %301 : vector<1x4x256xf32> to vector<4x256xf32>
    %303 = arith.addf %300, %302 : vector<4x256xf32>
    %c1_214 = arith.constant 1 : index
    %c0_215 = arith.constant 0 : index
    %c0_216 = arith.constant 0 : index
    %304 = vector.load %arg4[%c1_214, %c0_215, %c0_216] : memref<2x4x256xf32, #tpu.memory_space<vmem>>, vector<1x4x256xf32>
    %305 = vector.shape_cast %304 : vector<1x4x256xf32> to vector<4x256xf32>
    %306 = vector.shape_cast %303 : vector<4x256xf32> to vector<1x4x256xf32>
    tpu.vector_store %arg4[%c1_214, %c0_215, %c0_216], %306 {strides = array<i32>} : memref<2x4x256xf32, #tpu.memory_space<vmem>>, vector<1x4x256xf32>,
    return
  }
  func.func @transform_0(%arg0: i32) -> (i32, i32, i32) {
    %c0_i32 = arith.constant 0 : i32
    %c0_i32_0 = arith.constant 0 : i32
    %c0_i32_1 = arith.constant 0 : i32
    %c0_i32_2 = arith.constant 0 : i32
    return %c0_i32, %c0_i32_0, %c0_i32_1 : i32, i32, i32
  }
  func.func @transform_1(%arg0: i32) -> (i32, i32, i32) {
    %c0_i32 = arith.constant 0 : i32
    %c0_i32_0 = arith.constant 0 : i32
    %c0_i32_1 = arith.constant 0 : i32
    %c0_i32_2 = arith.constant 0 : i32
    return %c0_i32, %c0_i32_0, %c0_i32_1 : i32, i32, i32
  }
  func.func @transform_2(%arg0: i32) -> (i32, i32) {
    %c0_i32 = arith.constant 0 : i32
    %c0_i32_0 = arith.constant 0 : i32
    %c0_i32_1 = arith.constant 0 : i32
    return %c0_i32, %c0_i32_0 : i32, i32
  }
  func.func @transform_3(%arg0: i32) -> (i32, i32, i32) {
    %c0_i32 = arith.constant 0 : i32
    %c0_i32_0 = arith.constant 0 : i32
    %c0_i32_1 = arith.constant 0 : i32
    %c0_i32_2 = arith.constant 0 : i32
    return %c0_i32, %c0_i32_0, %c0_i32_1 : i32, i32, i32
  }
}

</mosaic_0001>

<bundles_post_ra>
// kernel: rb_forward.1
= control target key start
LH: loop header
LB: loop body
LE: loop exit
PB: predicated region body
PF: predicated region fallthrough
CT: control target
= control target key end

     0   :  { %v1356_v3 = vmov 0.0   ;;  %s1357_s20 = smov 17   ;;  %s1358_s21 = smov 16   ;;  %v14_v10 = vlaneseq  ;;  %vm80_vm0 = vcmask 138240   ;;  %vm160_vm1 = vcmask 130048   ;;  %s1799_s0 = inlined_call_operand.vmem [shape: f32[2,8,256], index: 0, kind: input, shape index: {}]   ;;  %s1800_s1 = inlined_call_operand.vmem [shape: f32[2,8,72], index: 1, kind: input, shape index: {}]   ;;  %s1801_s2 = inlined_call_operand.vmem [shape: f32[8,128], index: 2, kind: input, shape index: {}]   ;;  %s1802_s3 = inlined_call_operand.vmem [shape: f32[2,4,256], index: 3, kind: output, shape index: {}]  }
   0x1   :  { %v1394_v0 = vld [vmem:[%s1799_s0 + $0x10] sm:$0xff]  ;;  %v1399_v1 = vld [vmem:[%s1799_s0 + $0x18] sm:$0xff]  ;;  %v1404_v2 = vld [vmem:[%s1799_s0] sm:$0xff]  ;;  %244 = vmatprep.mubr.f32.mxu0 %v1356_v3  ;;  %464 = vmatprep.mubr.f32.mxu1 %v1356_v3  ;;  %s1359_s22 = smov 1   ;;  %s1360_s23 = smov 15   ;;  %vm1365_vm3 = vmmov 1  }
   0x2   :  { %v1131_v4 = vpack.i.bf16 %v1399_v1, %v1394_v0  ;;  %v1412_v5 = vld [vmem:[%s1799_s0 + $0x8] sm:$0xff]  ;;  %v1186_v7 = vpack.i.bf16 %v1356_v3, %v1399_v1  ;;  %s1361_s24 = smov 127   ;;  %v1191_v9 = vpack.i.bf16 %v1394_v0, %v1404_v2  ;;  %s1362_s25 = smov 113   ;;  %v1458_v11 = vand.u32 127, %v14_v10 }
   0x3   :  { %v1121_v6 = vpack.i.bf16 %v1412_v5, %v1404_v2  ;;  %v1181_v8 = vpack.i.bf16 %v1356_v3, %v1412_v5  ;;  %s1363_s26 = smov 112   ;;  %s1364_s27 = smov 111   ;;  %vm106_vm6 = vcmask 7168   ;;  %vm93_vm7 = vcmask 121856  }
   0x4   :  { %1132 = vrot.lane.b32.xlu1 %v1131_v4, %s1357_s20  ;;  %v16_v12 = vadd.s32 128, %v1458_v11  ;;  %v21_v26 = vand.u32 15, %v1458_v11  ;;  %vm1807_vm12 = vcmask 1039360   ;;  %vm1806_vm15 = vcmask 924672  }
   0x5   :  { %1122 = vrot.lane.b32.xlu0 %v1121_v6, %s1357_s20 }
   0x6   :  { %v28_v14 = vand.u32 15, %v16_v12  ;;  %vm1477_vm5 = vcmp.gt.s32.totalorder %v21_v26, 0  ;;  %vm1518_vm11 = vcmp.lt.s32.totalorder %v21_v26, 15 }
   0x7   :  { %vm1491_vm8 = vmpackc.low %vm1365_vm3, %vm1477_vm5 }
   0x8   :  { %1137 = vrot.lane.b32.xlu1 %v1131_v4, %s1358_s21  ;;  %vm1461_vm2 = vcmp.gt.s32.totalorder %v28_v14, 0  ;;  %vm1496_vm9 = vcmp.lt.s32.totalorder %v28_v14, 15  ;;  %vm1532_vm13 = vmpackc.low %vm1477_vm5, %vm1518_vm11  ;;  %vm1803_vm5 = vcmask 916480   ;;  %v1369_v14 = vmov 2  }
   0x9   :  { %1127 = vrot.lane.b32.xlu0 %v1121_v6, %s1358_s21  ;;  %vm1470_vm4 = vmpackc.low %vm1365_vm3, %vm1461_vm2 }
   0xa   :  { %vm1510_vm10 = vmpackc.low %vm1461_vm2, %vm1496_vm9 }
   0xb   :  { %vm1546_vm14 = vmpackc.low %vm1496_vm9, %vm1365_vm3 }
   0xc   :  { %1147 = vrot.lane.b32.xlu1 %v1356_v3, %s1358_s21  ;;  %vm1560_vm2 = vmpackc.low %vm1518_vm11, %vm1365_vm3  ;;  %vm1805_vm3 = vcmask 908288  }
   0xd   :  { %1142 = vrot.lane.b32.xlu0 %v1356_v3, %s1357_s20 }
  0x10   :  { %1157 = vrot.lane.b32.xlu1 %v1121_v6, %s1359_s22 }
  0x11   :  { %1152 = vrot.lane.b32.xlu0 %v1121_v6, %s1360_s23 }
  0x14   :  { %1167 = vrot.lane.b32.xlu1 %v1131_v4, %s1359_s22 }
  0x15   :  { %1162 = vrot.lane.b32.xlu0 %v1131_v4, %s1360_s23 }
  0x18   :  { %1177 = vrot.lane.b32.xlu1 %v1356_v3, %s1359_s22 }
  0x19   :  { %1172 = vrot.lane.b32.xlu0 %v1356_v3, %s1360_s23 }
  0x1c   :  { %1187 = vrot.lane.b32.xlu1 %v1186_v7, %s1361_s24 }
  0x1d   :  { %1182 = vrot.lane.b32.xlu0 %v1181_v8, %s1361_s24 }
  0x20   :  { %1197 = vrot.lane.b32.xlu1 %v1181_v8, %s1362_s25 }
  0x21   :  { %1192 = vrot.lane.b32.xlu0 %v1191_v9, %s1361_s24 }
  0x24   :  { %1207 = vrot.lane.b32.xlu1 %v1186_v7, %s1362_s25 }
  0x25   :  { %1202 = vrot.lane.b32.xlu0 %v1181_v8, %s1363_s26 }
  0x28   :  { %1217 = vrot.lane.b32.xlu1 %v1191_v9, %s1362_s25 }
  0x29   :  { %1212 = vrot.lane.b32.xlu0 %v1186_v7, %s1363_s26 }
  0x2c   :  { %143 = vrot.lane.b32.xlu1 %v1412_v5, %s1364_s27 }
  0x2d   :  { %1222 = vrot.lane.b32.xlu0 %v1191_v9, %s1363_s26 }
  0x30   :  { %370 = vrot.lane.b32.xlu1 %v1399_v1, %s1364_s27 }
  0x31   :  { %1227 = vrot.lane.b32.xlu0 %v1356_v3, %s1364_s27 }
  0x34   :  { %368 = vrot.lane.b32.xlu1 %v1394_v0, %s1364_s27 }
  0x35   :  { %141 = vrot.lane.b32.xlu0 %v1404_v2, %s1364_s27 }
  0x76   :  { %v1133_v13 = vpop.permute.xlu1 %1132 }
  0x77   :  { %v1135_v15 = vunpack.i.h.bf16 %v1133_v13  ;;  %v1134_v16 = vunpack.i.l.bf16 %v1133_v13  ;;  %v1123_v17 = vpop.permute.xlu0 %1122 }
  0x78   :  { %v1125_v18 = vunpack.i.h.bf16 %v1123_v17  ;;  %v1124_v19 = vunpack.i.l.bf16 %v1123_v17 }
  0x79   :  { %v313_v25 = vsel %vm80_vm0, %v1134_v16, %v1135_v15 }
  0x7a   :  { %v1138_v20 = vpop.permute.xlu1 %1137  ;;  %v82_v32 = vsel %vm80_vm0, %v1124_v19, %v1125_v18 }
  0x7b   :  { %v1140_v22 = vunpack.i.h.bf16 %v1138_v20  ;;  %v1139_v23 = vunpack.i.l.bf16 %v1138_v20  ;;  %v1128_v24 = vpop.permute.xlu0 %1127 }
  0x7c   :  { %v1130_v27 = vunpack.i.h.bf16 %v1128_v24  ;;  %v1129_v28 = vunpack.i.l.bf16 %v1128_v24 }
  0x7d   :  { %v387_v30 = vsel %vm160_vm1, %v1139_v23, %v1140_v22 }
  0x7e   :  { %v1148_v31 = vpop.permute.xlu1 %1147  ;;  %v162_v33 = vsel %vm160_vm1, %v1129_v28, %v1130_v27  ;;  %v1034_v34 = vpack.c.bf16 %v387_v30, %v313_v25 }
  0x7f   :  { %v1150_v35 = vunpack.i.h.bf16 %v1148_v31  ;;  %v1149_v36 = vunpack.i.l.bf16 %v1148_v31  ;;  %v1143_v37 = vpop.permute.xlu0 %1142  ;;  %v1010_v38 = vpack.c.bf16 %v162_v33, %v82_v32 }
  0x80   :  { %v1145_v40 = vunpack.i.h.bf16 %v1143_v37  ;;  %v1144_v41 = vunpack.i.l.bf16 %v1143_v37  ;;  %1036 = vmatprep.subr.msk.bf16.mxu1 %vm1470_vm4, %v1034_v34 }
  0x81   :  { %1012 = vmatprep.subr.msk.bf16.mxu0 %vm1470_vm4, %v1010_v38  ;;  %v161_v42 = vsel %vm160_vm1, %v1149_v36, %v1129_v28  ;;  %v386_v43 = vsel %vm160_vm1, %v1150_v35, %v1139_v23 }
  0x82   :  { %v1158_v44 = vpop.permute.xlu1 %1157  ;;  %v81_v45 = vsel %vm80_vm0, %v1144_v41, %v1124_v19  ;;  %v312_v47 = vsel %vm80_vm0, %v1145_v40, %v1134_v16 }
  0x83   :  { %v1160_v49 = vunpack.i.h.bf16 %v1158_v44  ;;  %v1159_v50 = vunpack.i.l.bf16 %v1158_v44  ;;  %v1153_v51 = vpop.permute.xlu0 %1152  ;;  %v1013_v52 = vpack.c.bf16 %v161_v42, %v81_v45  ;;  %v1037_v53 = vpack.c.bf16 %v386_v43, %v312_v47 }
  0x84   :  { %v1155_v54 = vunpack.i.h.bf16 %v1153_v51  ;;  %v1154_v55 = vunpack.i.l.bf16 %v1153_v51 }
  0x85   :  { %v108_v56 = vsel %vm106_vm6, %v1159_v50, %v1160_v49  ;;  %1015 = vmatpush1.bf16.msk.msra.mxu0 %vm1491_vm8, %v1013_v52  ;;  %1039 = vmatpush1.bf16.msk.msra.mxu1 %vm1491_vm8, %v1037_v53 }
  0x86   :  { %v95_v57 = vsel %vm93_vm7, %v1154_v55, %v1155_v54  ;;  %v1168_v58 = vpop.permute.xlu1 %1167 }
  0x87   :  { %v1016_v60 = vpack.c.bf16 %v108_v56, %v95_v57  ;;  %v1170_v61 = vunpack.i.h.bf16 %v1168_v58  ;;  %v1169_v62 = vunpack.i.l.bf16 %v1168_v58  ;;  %v1163_v63 = vpop.permute.xlu0 %1162 }
  0x88   :  { %v1165_v4 = vunpack.i.h.bf16 %v1163_v63  ;;  %v1164_v6 = vunpack.i.l.bf16 %v1163_v63 }
  0x89   :  { %v337_v7 = vsel %vm106_vm6, %v1169_v62, %v1170_v61  ;;  %1018 = vmatprep.subr.msk.bf16.mxu0 %vm1510_vm10, %v1016_v60 }
  0x8a   :  { %v325_v8 = vsel %vm93_vm7, %v1164_v6, %v1165_v4  ;;  %v1178_v9 = vpop.permute.xlu1 %1177 }
  0x8b   :  { %v1040_v10 = vpack.c.bf16 %v337_v7, %v325_v8  ;;  %v1180_v11 = vunpack.i.h.bf16 %v1178_v9  ;;  %v1179_v12 = vunpack.i.l.bf16 %v1178_v9  ;;  %v1173_v13 = vpop.permute.xlu0 %1172 }
  0x8c   :  { %v1175_v15 = vunpack.i.h.bf16 %v1173_v13  ;;  %v1174_v16 = vunpack.i.l.bf16 %v1173_v13 }
  0x8d   :  { %v107_v17 = vsel %vm106_vm6, %v1179_v12, %v1159_v50  ;;  %v336_v18 = vsel %vm106_vm6, %v1180_v11, %v1169_v62  ;;  %1042 = vmatprep.subr.msk.bf16.mxu1 %vm1510_vm10, %v1040_v10 }
  0x8e   :  { %v94_v19 = vsel %vm93_vm7, %v1174_v16, %v1154_v55  ;;  %v324_v20 = vsel %vm93_vm7, %v1175_v15, %v1164_v6  ;;  %v1188_v21 = vpop.permute.xlu1 %1187 }
  0x8f   :  { %v1019_v23 = vpack.c.bf16 %v107_v17, %v94_v19  ;;  %v1043_v24 = vpack.c.bf16 %v336_v18, %v324_v20  ;;  %v1190_v25 = vunpack.i.h.bf16 %v1188_v21  ;;  %v1189_v26 = vunpack.i.l.bf16 %v1188_v21  ;;  %v1183_v27 = vpop.permute.xlu0 %1182 }
  0x90   :  { %v1185_v28 = vunpack.i.h.bf16 %v1183_v27  ;;  %v1184_v30 = vunpack.i.l.bf16 %v1183_v27 }
  0x91   :  { %v351_v31 = vsel %vm1807_vm12, %v1189_v26, %v1190_v25  ;;  %1021 = vmatpush1.bf16.msk.msra.mxu0 %vm1532_vm13, %v1019_v23  ;;  %1045 = vmatpush1.bf16.msk.msra.mxu1 %vm1532_vm13, %v1043_v24 }
  0x92   :  { %v1046_v32 = vpack.c.bf16 %v351_v31, %v1399_v1  ;;  %v123_v33 = vsel %vm1807_vm12, %v1184_v30, %v1185_v28  ;;  %v1198_v34 = vpop.permute.xlu1 %1197 }
  0x93   :  { %v1022_v36 = vpack.c.bf16 %v123_v33, %v1412_v5  ;;  %v1200_v37 = vunpack.i.h.bf16 %v1198_v34  ;;  %v1199_v38 = vunpack.i.l.bf16 %v1198_v34  ;;  %v1193_v39 = vpop.permute.xlu0 %1192 }
  0x94   :  { %v1195_v40 = vunpack.i.h.bf16 %v1193_v39  ;;  %v1194_v41 = vunpack.i.l.bf16 %v1193_v39  ;;  %1048 = vmatprep.subr.msk.bf16.mxu1 %vm1546_vm14, %v1046_v32 }
  0x95   :  { %1024 = vmatprep.subr.msk.bf16.mxu0 %vm1546_vm14, %v1022_v36  ;;  %v136_v44 = vsel %vm1806_vm15, %v1199_v38, %v1200_v37 }
  0x96   :  { %v350_v1 = vsel %vm1807_vm12, %v1195_v40, %v1189_v26  ;;  %v122_v42 = vsel %vm1807_vm12, %v1194_v41, %v1184_v30  ;;  %v1208_v43 = vpop.permute.xlu1 %1207  ;;  %v46_v26 = vld [vmem:[%s1800_s1] sm:$0xff] }
  0x97   :  { %v1049_v45 = vpack.c.bf16 %v350_v1, %v1394_v0  ;;  %v1025_v47 = vpack.c.bf16 %v122_v42, %v1404_v2  ;;  %v1203_v49 = vpop.permute.xlu0 %1202  ;;  %v1210_v50 = vunpack.i.h.bf16 %v1208_v43  ;;  %v1209_v51 = vunpack.i.l.bf16 %v1208_v43 }
  0x98   :  { %v1205_v52 = vunpack.i.h.bf16 %v1203_v49  ;;  %v1204_v53 = vunpack.i.l.bf16 %v1203_v49  ;;  %v1366_v1 = vmov 0  }
  0x99   :  { %1027 = vmatpush1.bf16.msk.msra.mxu0 %vm1560_vm2, %v1025_v47  ;;  %1051 = vmatpush1.bf16.msk.msra.mxu1 %vm1560_vm2, %v1049_v45  ;;  %v363_v0 = vsel %vm1806_vm15, %v1209_v51, %v1210_v50 }
  0x9a   :  { %v173_v54 = vsel %vm1803_vm5, %v1204_v53, %v1205_v52  ;;  %v1218_v55 = vpop.permute.xlu1 %1217  ;;  %1231 = vset.pattern.permute.xlu1 %v1366_v1 }
  0x9b   :  { %v1028_v56 = vpack.c.bf16 %v173_v54, %v136_v44  ;;  %v1213_v57 = vpop.permute.xlu0 %1212  ;;  %v1220_v60 = vunpack.i.h.bf16 %v1218_v55  ;;  %v1219_v61 = vunpack.i.l.bf16 %v1218_v55 }
  0x9c   :  { %v1215_v2 = vunpack.i.h.bf16 %v1213_v57  ;;  %v1214_v58 = vunpack.i.l.bf16 %v1213_v57 }
  0x9d   :  { %1030 = vmatprep.subr.msk.bf16.mxu0 %vm1470_vm4, %v1028_v56  ;;  %v135_v9 = vsel %vm1806_vm15, %v1219_v61, %v1199_v38  ;;  %v362_v10 = vsel %vm1806_vm15, %v1220_v60, %v1209_v51 }
  0x9e   :  { %v397_v62 = vsel %vm1803_vm5, %v1214_v58, %v1215_v2  ;;  %v144_v63 = vpop.permute.xlu1 %143  ;;  %v1628_v2 = vld [vmem:[%s1801_s2] sm:$0xff] }
  0x9f   :  { %v1052_v4 = vpack.c.bf16 %v397_v62, %v363_v0  ;;  %v1223_v6 = vpop.permute.xlu0 %1222  ;;  %v1367_v0 = vmov 1  }
  0xa0   :  { %v1225_v7 = vunpack.i.h.bf16 %v1223_v6  ;;  %v1224_v8 = vunpack.i.l.bf16 %v1223_v6  ;;  %1232 = vset.pattern.permute.xlu0 %v1367_v0 }
  0xa1   :  { %1054 = vmatprep.subr.msk.bf16.mxu1 %vm1470_vm4, %v1052_v4 }
  0xa2   :  { %v172_v11 = vsel %vm1803_vm5, %v1224_v8, %v1204_v53  ;;  %v396_v12 = vsel %vm1803_vm5, %v1225_v7, %v1214_v58  ;;  %v371_v13 = vpop.permute.xlu1 %370  ;;  %vm1804_vm5 = vcmask 588800  }
  0xa3   :  { %v1031_v15 = vpack.c.bf16 %v172_v11, %v135_v9  ;;  %v1055_v16 = vpack.c.bf16 %v396_v12, %v362_v10  ;;  %v1228_v17 = vpop.permute.xlu0 %1227  ;;  %v1368_v10 = vmov 4  }
  0xa4   :  { %v1230_v18 = vunpack.i.h.bf16 %v1228_v17  ;;  %v1229_v19 = vunpack.i.l.bf16 %v1228_v17 }
  0xa5   :  { %1033 = vmatpush1.bf16.msk.msra.mxu0 %vm1491_vm8, %v1031_v15  ;;  %1057 = vmatpush1.bf16.msk.msra.mxu1 %vm1491_vm8, %v1055_v16 }
  0xa6   :  { %v375_v20 = vsel %vm1805_vm3, %v371_v13, %v1230_v18  ;;  %v149_v21 = vsel %vm1805_vm3, %v144_v63, %v1229_v19  ;;  %v369_v23 = vpop.permute.xlu1 %368 }
  0xa7   :  { %v142_v24 = vpop.permute.xlu0 %141  ;;  %965 = vmatprep.subr.msk.mxu0 %vm1496_vm9, %v149_v21  ;;  %978 = vmatprep.subr.msk.mxu1 %vm1496_vm9, %v375_v20  ;;  %v374_v25 = vsel %vm1805_vm3, %v369_v23, %v371_v13 }
  0xa8   :  { %v148_v27 = vsel %vm1805_vm3, %v142_v24, %v144_v63 }
  0xa9   :  { %966 = vmatpush1.msk.msra.mxu0 %vm1518_vm11, %v148_v27  ;;  %979 = vmatpush1.msk.msra.mxu1 %vm1518_vm11, %v374_v25 }
  0xaa   :  { %967 = vmatmul.mubr.msk.f32.vlgmr.msra.gmra.mrb[0].mxu0 %vm1804_vm5, %v46_v26  ;;  %980 = vmatmul.mubr.msk.f32.vlgmr.msra.gmra.mrb[0].mxu1 %vm1804_vm5, %v46_v26 }
  0xab   :  { %681 = vmatprep.mubr.f32.mxu0 %v1356_v3  ;;  %896 = vmatprep.mubr.f32.mxu1 %v1356_v3 }
 0x17d   :  { %v1605_v28 = vpop.f32.mrb[0].mxu0  ;;  %v1607_v30 = vpop.f32.mrb[0].mxu1 }
 0x17e   :  { %v1609_v31 = vpop.f32.mrb[1].mxu0  ;;  %v1611_v32 = vpop.f32.mrb[1].mxu1  ;;  %v256_v33 = vmul.f32 %v1605_v28, %v1605_v28  ;;  %v475_v34 = vmul.f32 %v1607_v30, %v1607_v30 }
 0x17f   :  { %v251_v36 = vadd.f32 %v1609_v31, %v1605_v28  ;;  %v257_v37 = vmul.f32 %v1609_v31, %v1609_v31  ;;  %v471_v38 = vadd.f32 %v1611_v32, %v1607_v30  ;;  %v476_v39 = vmul.f32 %v1611_v32, %v1611_v32 }
 0x181   :  { %252 = vadd.xlane.f32.xlu0 %v251_v36  ;;  %v258_v40 = vadd.f32 %v257_v37, %v256_v33  ;;  %472 = vadd.xlane.f32.xlu1 %v471_v38  ;;  %v477_v41 = vadd.f32 %v476_v39, %v475_v34 }
 0x185   :  { %259 = vadd.xlane.f32.xlu0 %v258_v40 }
 0x189   :  { %478 = vadd.xlane.f32.xlu0 %v477_v41 }
 0x20e   :  { %v253_v42 = vpop.xlane.xlu0 %252  ;;  %v473_v43 = vpop.xlane.xlu1 %472 }
 0x20f   :  { %v255_v44 = vmul.f32 0.00390625, %v253_v42  ;;  %v474_v45 = vmul.f32 0.00390625, %v473_v43 }
 0x211   :  { %v262_v49 = vmul.f32 %v255_v44, %v255_v44  ;;  %v481_v52 = vmul.f32 %v474_v45, %v474_v45 }
 0x212   :  { %v260_v47 = vpop.xlane.xlu0 %259 }
 0x213   :  { %v261_v50 = vmul.f32 0.00390625, %v260_v47 }
 0x215   :  { %v263_v51 = vsub.f32 %v261_v50, %v262_v49 }
 0x216   :  { %v479_v53 = vpop.xlane.xlu0 %478 }
 0x217   :  { %v264_v54 = vadd.f32 1e-05, %v263_v51  ;;  %v480_v55 = vmul.f32 0.00390625, %v479_v53 }
 0x219   :  { %1348 = vrsqrt.f32 %v264_v54  ;;  %v482_v56 = vsub.f32 %v480_v55, %v481_v52 }
 0x21b   :  { %v483_v57 = vadd.f32 1e-05, %v482_v56 }
 0x21d   :  { %1350 = vrsqrt.f32 %v483_v57 }
 0x223   :  { %v1349_v58 = vpop.eup %1348 }
 0x224   :  { %v266_v60 = vmul.f32 %v1349_v58, %v1628_v2 }
 0x226   :  { %v267_v61 = vmul.f32 %v266_v60, %v255_v44 }
 0x227   :  { %v1351_v62 = vpop.eup %1350 }
 0x228   :  { %269 = vrot.lane.b32.xlu1 %v267_v61, %s1359_s22  ;;  %v485_v63 = vmul.f32 %v1351_v62, %v1628_v2 }
 0x22a   :  { %v486_v4 = vmul.f32 %v485_v63, %v474_v45 }
 0x22c   :  { %275 = vperm.xlu1 %1231, %v266_v60   ;;  %488 = vrot.lane.b32.xlu0 %v486_v4, %s1359_s22 }
 0x230   :  { %494 = vperm.xlu1 %1231, %v485_v63  }
 0x234   :  { %1233 = vset.pattern.permute.xlu1 %v1367_v0 }
 0x29a   :  { %v270_v6 = vpop.permute.xlu1 %269 }
 0x29b   :  { %v272_v7 = vsub.f32 %v1628_v2, %v270_v6 }
 0x29d   :  { %282 = vperm.xlu0 %1232, %v272_v7  }
 0x29e   :  { %v489_v8 = vpop.permute.xlu0 %488 }
 0x29f   :  { %v491_v9 = vsub.f32 %v1628_v2, %v489_v8 }
 0x2a1   :  { %501 = vperm.xlu1 %1233, %v491_v9   ;;  %1236 = vrot.lane.b32.xlu0 %v1356_v3, %s1357_s20 }
 0x2a5   :  { %1234 = vset.pattern.permute.xlu1 %v1368_v10  ;;  %1246 = vrot.lane.b32.xlu0 %v1356_v3, %s1360_s23 }
 0x2a6   :  { %291 = vperm.xlu1 %1234, %v1628_v2  }
 0x2aa   :  { %1241 = vrot.lane.b32.xlu1 %v1356_v3, %s1358_s21 }
 0x2ab   :  { %v276_v11 = vpop.permute.xlu1 %275  ;;  %1345 = vset.pattern.permute.xlu1 %v1369_v14 }
 0x2ac   :  { %v278_v16 = vmul.f32 %v276_v11, %v1605_v28  ;;  %v279_v17 = vmul.f32 %v276_v11, %v1609_v31 }
 0x2ae   :  { %1251 = vrot.lane.b32.xlu1 %v1356_v3, %s1359_s22 }
 0x2af   :  { %v495_v12 = vpop.permute.xlu1 %494 }
 0x2b0   :  { %v497_v18 = vmul.f32 %v495_v12, %v1607_v30  ;;  %v498_v19 = vmul.f32 %v495_v12, %v1611_v32 }
 0x31c   :  { %v283_v13 = vpop.permute.xlu0 %282 }
 0x31d   :  { %v285_v20 = vadd.f32 %v283_v13, %v278_v16  ;;  %v286_v21 = vadd.f32 %v283_v13, %v279_v17 }
 0x31f   :  { %vm287_vm5 = vcmp.ge.f32.partialorder %v285_v20, 0.0  ;;  %vm288_vm3 = vcmp.ge.f32.partialorder %v286_v21, 0.0 }
 0x320   :  { %v502_v15 = vpop.permute.xlu1 %501  ;;  %v1237_v1 = vpop.permute.xlu0 %1236 }
 0x321   :  { %v504_v23 = vadd.f32 %v502_v15, %v497_v18  ;;  %v505_v24 = vadd.f32 %v502_v15, %v498_v19  ;;  %v1238_v45 = vunpack.i.l.bf16 %v1237_v1  ;;  %v1239_v0 = vunpack.i.h.bf16 %v1237_v1 }
 0x323   :  { %vm506_vm15 = vcmp.ge.f32.partialorder %v504_v23, 0.0  ;;  %vm507_vm12 = vcmp.ge.f32.partialorder %v505_v24, 0.0 }
 0x324   :  { %v1247_v43 = vpop.permute.xlu0 %1246 }
 0x325   :  { %v292_v25 = vpop.permute.xlu1 %291  ;;  %v1248_v13 = vunpack.i.l.bf16 %v1247_v43 }
 0x326   :  { %v294_v26 = vmul.f32 %v292_v25, %v285_v20  ;;  %v295_v27 = vmul.f32 %v292_v25, %v286_v21  ;;  %v508_v33 = vmul.f32 %v504_v23, %v292_v25  ;;  %v509_v34 = vmul.f32 %v505_v24, %v292_v25 }
 0x328   :  { %v1649_v36 = vsel %vm287_vm5, %v285_v20, %v294_v26  ;;  %v1651_v28 = vsel %vm288_vm3, %v286_v21, %v295_v27  ;;  %v1655_v31 = vsel %vm506_vm15, %v504_v23, %v508_v33  ;;  %v1657_v32 = vsel %vm507_vm12, %v505_v24, %v509_v34 }
 0x329   :  { %v1260_v30 = vpack.i.bf16 %v1651_v28, %v1649_v36  ;;  %v1270_v37 = vpack.i.bf16 %v1657_v32, %v1655_v31  ;;  %v1300_v38 = vpack.i.bf16 %v1356_v3, %v1657_v32  ;;  %v1295_v39 = vpack.i.bf16 %v1356_v3, %v1651_v28  ;;  %v1242_v41 = vpop.permute.xlu1 %1241 }
 0x32a   :  { %v1305_v40 = vpack.i.bf16 %v1655_v31, %v1649_v36  ;;  %v1243_v44 = vunpack.i.l.bf16 %v1242_v41  ;;  %v1244_v57 = vunpack.i.h.bf16 %v1242_v41  ;;  %v1249_v34 = vunpack.i.h.bf16 %v1247_v43 }
 0x32b   :  { %1261 = vrot.lane.b32.xlu1 %v1260_v30, %s1358_s21  ;;  %1256 = vrot.lane.b32.xlu0 %v1260_v30, %s1357_s20  ;;  %vm1833_vm12 = vcmask 916480  }
 0x32c   :  { %vm1838_vm5 = vmmov %vm1833_vm12 }
 0x32d   :  { %v1252_v42 = vpop.permute.xlu1 %1251  ;;  %vm1839_vm3 = vmmov %vm1838_vm5 }
 0x32e   :  { %v1253_v12 = vunpack.i.l.bf16 %v1252_v42  ;;  %v1254_v33 = vunpack.i.h.bf16 %v1252_v42 }
 0x32f   :  { %1271 = vrot.lane.b32.xlu1 %v1270_v37, %s1358_s21  ;;  %1266 = vrot.lane.b32.xlu0 %v1270_v37, %s1357_s20 }
 0x333   :  { %1281 = vrot.lane.b32.xlu1 %v1260_v30, %s1359_s22  ;;  %1276 = vrot.lane.b32.xlu0 %v1260_v30, %s1360_s23 }
 0x337   :  { %1291 = vrot.lane.b32.xlu1 %v1270_v37, %s1359_s22  ;;  %1286 = vrot.lane.b32.xlu0 %v1270_v37, %s1360_s23 }
 0x33b   :  { %1301 = vrot.lane.b32.xlu1 %v1300_v38, %s1361_s24  ;;  %1296 = vrot.lane.b32.xlu0 %v1295_v39, %s1361_s24 }
 0x33f   :  { %1311 = vrot.lane.b32.xlu1 %v1295_v39, %s1362_s25  ;;  %1306 = vrot.lane.b32.xlu0 %v1305_v40, %s1361_s24 }
 0x343   :  { %1321 = vrot.lane.b32.xlu1 %v1300_v38, %s1362_s25  ;;  %1316 = vrot.lane.b32.xlu0 %v1295_v39, %s1363_s26 }
 0x347   :  { %1331 = vrot.lane.b32.xlu1 %v1305_v40, %s1362_s25  ;;  %1326 = vrot.lane.b32.xlu0 %v1300_v38, %s1363_s26 }
 0x34b   :  { %584 = vrot.lane.b32.xlu1 %v1651_v28, %s1364_s27  ;;  %1336 = vrot.lane.b32.xlu0 %v1305_v40, %s1363_s26 }
 0x34f   :  { %802 = vrot.lane.b32.xlu1 %v1657_v32, %s1364_s27  ;;  %1341 = vrot.lane.b32.xlu0 %v1356_v3, %s1364_s27 }
 0x353   :  { %800 = vrot.lane.b32.xlu1 %v1655_v31, %s1364_s27  ;;  %582 = vrot.lane.b32.xlu0 %v1649_v36, %s1364_s27 }
 0x39d   :  { %v1262_v47 = vpop.permute.xlu1 %1261  ;;  %v1257_v49 = vpop.permute.xlu0 %1256 }
 0x39e   :  { %v1264_v50 = vunpack.i.h.bf16 %v1262_v47  ;;  %v1263_v51 = vunpack.i.l.bf16 %v1262_v47  ;;  %v1259_v52 = vunpack.i.h.bf16 %v1257_v49  ;;  %v1258_v53 = vunpack.i.l.bf16 %v1257_v49 }
 0x3a0   :  { %v600_v3 = vsel %vm160_vm1, %v1243_v44, %v1263_v51  ;;  %v601_v54 = vsel %vm160_vm1, %v1263_v51, %v1264_v50  ;;  %v526_v55 = vsel %vm80_vm0, %v1238_v45, %v1258_v53  ;;  %v527_v56 = vsel %vm80_vm0, %v1258_v53, %v1259_v52 }
 0x3a1   :  { %v1058_v58 = vpack.c.bf16 %v601_v54, %v527_v56  ;;  %v1061_v60 = vpack.c.bf16 %v600_v3, %v526_v55  ;;  %v1272_v61 = vpop.permute.xlu1 %1271  ;;  %v1267_v62 = vpop.permute.xlu0 %1266 }
 0x3a2   :  { %v1274_v63 = vunpack.i.h.bf16 %v1272_v61  ;;  %v1273_v4 = vunpack.i.l.bf16 %v1272_v61  ;;  %v1269_v6 = vunpack.i.h.bf16 %v1267_v62  ;;  %v1268_v7 = vunpack.i.l.bf16 %v1267_v62 }
 0x3a3   :  { %1060 = vmatprep.subr.msk.bf16.mxu0 %vm1470_vm4, %v1058_v58 }
 0x3a4   :  { %v818_v8 = vsel %vm160_vm1, %v1244_v57, %v1273_v4  ;;  %v819_v9 = vsel %vm160_vm1, %v1273_v4, %v1274_v63  ;;  %v744_v10 = vsel %vm80_vm0, %v1239_v0, %v1268_v7  ;;  %v745_v11 = vsel %vm80_vm0, %v1268_v7, %v1269_v6  ;;  %1063 = vmatpush1.bf16.msk.msra.mxu0 %vm1491_vm8, %v1061_v60 }
 0x3a5   :  { %v1082_v15 = vpack.c.bf16 %v819_v9, %v745_v11  ;;  %v1085_v16 = vpack.c.bf16 %v818_v8, %v744_v10  ;;  %v1282_v17 = vpop.permute.xlu1 %1281  ;;  %v1277_v18 = vpop.permute.xlu0 %1276  ;;  %vm1828_vm0 = vcmask 1039360  }
 0x3a6   :  { %v1284_v19 = vunpack.i.h.bf16 %v1282_v17  ;;  %v1283_v20 = vunpack.i.l.bf16 %v1282_v17  ;;  %v1279_v21 = vunpack.i.h.bf16 %v1277_v18  ;;  %v1278_v23 = vunpack.i.l.bf16 %v1277_v18  ;;  %vm1829_vm1 = vmmov %vm1828_vm0 }
 0x3a7   :  { %1084 = vmatprep.subr.msk.bf16.mxu1 %vm1470_vm4, %v1082_v15 }
 0x3a8   :  { %v550_v24 = vsel %vm106_vm6, %v1253_v12, %v1283_v20  ;;  %v551_v25 = vsel %vm106_vm6, %v1283_v20, %v1284_v19  ;;  %v538_v26 = vsel %vm93_vm7, %v1248_v13, %v1278_v23  ;;  %v539_v27 = vsel %vm93_vm7, %v1278_v23, %v1279_v21  ;;  %1087 = vmatpush1.bf16.msk.msra.mxu1 %vm1491_vm8, %v1085_v16 }
 0x3a9   :  { %v1064_v30 = vpack.c.bf16 %v551_v25, %v539_v27  ;;  %v1067_v37 = vpack.c.bf16 %v550_v24, %v538_v26  ;;  %v1292_v38 = vpop.permute.xlu1 %1291  ;;  %v1287_v39 = vpop.permute.xlu0 %1286 }
 0x3aa   :  { %v1294_v40 = vunpack.i.h.bf16 %v1292_v38  ;;  %v1293_v41 = vunpack.i.l.bf16 %v1292_v38  ;;  %v1289_v1 = vunpack.i.h.bf16 %v1287_v39  ;;  %v1288_v44 = vunpack.i.l.bf16 %v1287_v39 }
 0x3ab   :  { %1066 = vmatprep.subr.msk.bf16.mxu0 %vm1510_vm10, %v1064_v30 }
 0x3ac   :  { %v768_v45 = vsel %vm106_vm6, %v1254_v33, %v1293_v41  ;;  %v769_v47 = vsel %vm106_vm6, %v1293_v41, %v1294_v40  ;;  %v756_v49 = vsel %vm93_vm7, %v1249_v34, %v1288_v44  ;;  %v757_v42 = vsel %vm93_vm7, %v1288_v44, %v1289_v1  ;;  %1069 = vmatpush1.bf16.msk.msra.mxu0 %vm1532_vm13, %v1067_v37  ;;  %vm1830_vm6 = vmmov %vm1828_vm0 }
 0x3ad   :  { %v1088_v43 = vpack.c.bf16 %v769_v47, %v757_v42  ;;  %v1091_v50 = vpack.c.bf16 %v768_v45, %v756_v49  ;;  %v1302_v51 = vpop.permute.xlu1 %1301  ;;  %v1297_v52 = vpop.permute.xlu0 %1296  ;;  %vm1831_vm7 = vmmov %vm1828_vm0  ;;  %v952_v45 = vld [vmem:[%s1800_s1 + $0x8] sm:$0xff] }
 0x3ae   :  { %v1304_v53 = vunpack.i.h.bf16 %v1302_v51  ;;  %v1303_v3 = vunpack.i.l.bf16 %v1302_v51  ;;  %v1299_v54 = vunpack.i.h.bf16 %v1297_v52  ;;  %v1298_v55 = vunpack.i.l.bf16 %v1297_v52 }
 0x3af   :  { %1090 = vmatprep.subr.msk.bf16.mxu1 %vm1510_vm10, %v1088_v43  ;;  %vm1832_vm10 = vcmask 924672  }
 0x3b0   :  { %v783_v56 = vsel %vm1828_vm0, %v1303_v3, %v1304_v53  ;;  %v565_v57 = vsel %vm1829_vm1, %v1298_v55, %v1299_v54  ;;  %1093 = vmatpush1.bf16.msk.msra.mxu1 %vm1532_vm13, %v1091_v50  ;;  %vm1834_vm13 = vmmov %vm1832_vm10 }
 0x3b1   :  { %v1094_v0 = vpack.c.bf16 %v783_v56, %v1657_v32  ;;  %v1070_v58 = vpack.c.bf16 %v565_v57, %v1651_v28  ;;  %v1312_v60 = vpop.permute.xlu1 %1311  ;;  %v1307_v61 = vpop.permute.xlu0 %1306  ;;  %vm1836_vm15 = vmmov %vm1832_vm10 }
 0x3b2   :  { %v1309_v62 = vunpack.i.h.bf16 %v1307_v61  ;;  %v1308_v63 = vunpack.i.l.bf16 %v1307_v61  ;;  %v1314_v59 = vunpack.i.h.bf16 %v1312_v60  ;;  %v1313_v4 = vunpack.i.l.bf16 %v1312_v60 }
 0x3b3   :  { %1072 = vmatprep.subr.msk.bf16.mxu0 %vm1546_vm14, %v1070_v58  ;;  %1096 = vmatprep.subr.msk.bf16.mxu1 %vm1546_vm14, %v1094_v0  ;;  %vm1835_vm14 = vmmov %vm1833_vm12 }
 0x3b4   :  { %v782_v6 = vsel %vm1830_vm6, %v1309_v62, %v1303_v3  ;;  %v564_v22 = vsel %vm1831_vm7, %v1308_v63, %v1298_v55  ;;  %v577_v35 = vsel %vm1832_vm10, %v1313_v4, %v1314_v59 }
 0x3b5   :  { %v1097_v32 = vpack.c.bf16 %v782_v6, %v1655_v31  ;;  %v1073_v28 = vpack.c.bf16 %v564_v22, %v1649_v36  ;;  %v1322_v7 = vpop.permute.xlu1 %1321  ;;  %v1317_v8 = vpop.permute.xlu0 %1316 }
 0x3b6   :  { %v1319_v9 = vunpack.i.h.bf16 %v1317_v8  ;;  %v1318_v10 = vunpack.i.l.bf16 %v1317_v8  ;;  %v1324_v11 = vunpack.i.h.bf16 %v1322_v7  ;;  %v1323_v12 = vunpack.i.l.bf16 %v1322_v7 }
 0x3b7   :  { %1075 = vmatpush1.bf16.msk.msra.mxu0 %vm1560_vm2, %v1073_v28  ;;  %1099 = vmatpush1.bf16.msk.msra.mxu1 %vm1560_vm2, %v1097_v32  ;;  %vm1837_vm2 = vmmov %vm1832_vm10 }
 0x3b8   :  { %v611_v13 = vsel %vm1833_vm12, %v1318_v10, %v1319_v9  ;;  %v795_v18 = vsel %vm1834_vm13, %v1323_v12, %v1324_v11 }
 0x3b9   :  { %v1076_v15 = vpack.c.bf16 %v611_v13, %v577_v35  ;;  %v1332_v31 = vpop.permute.xlu1 %1331  ;;  %v1327_v16 = vpop.permute.xlu0 %1326 }
 0x3ba   :  { %v1329_v36 = vunpack.i.h.bf16 %v1327_v16  ;;  %v1328_v17 = vunpack.i.l.bf16 %v1327_v16  ;;  %v1334_v19 = vunpack.i.h.bf16 %v1332_v31  ;;  %v1333_v20 = vunpack.i.l.bf16 %v1332_v31 }
 0x3bb   :  { %1078 = vmatprep.subr.msk.bf16.mxu0 %vm1470_vm4, %v1076_v15 }
 0x3bc   :  { %v829_v5 = vsel %vm1835_vm14, %v1328_v17, %v1329_v36  ;;  %v576_v27 = vsel %vm1836_vm15, %v1333_v20, %v1313_v4  ;;  %v794_v33 = vsel %vm1837_vm2, %v1334_v19, %v1323_v12 }
 0x3bd   :  { %v1100_v21 = vpack.c.bf16 %v829_v5, %v795_v18  ;;  %v585_v23 = vpop.permute.xlu1 %584  ;;  %v1337_v24 = vpop.permute.xlu0 %1336 }
 0x3be   :  { %v1339_v25 = vunpack.i.h.bf16 %v1337_v24  ;;  %v1338_v26 = vunpack.i.l.bf16 %v1337_v24  ;;  %v724_v24 = vld [vmem:[%s1799_s0 + $0x8] sm:$0xf] }
 0x3bf   :  { %1102 = vmatprep.subr.msk.bf16.mxu1 %vm1470_vm4, %v1100_v21  ;;  %vm1840_vm4 = vcmask 908288  }
 0x3c0   :  { %v610_v34 = vsel %vm1838_vm5, %v1338_v26, %v1318_v10  ;;  %v828_v30 = vsel %vm1839_vm3, %v1339_v25, %v1328_v17  ;;  %vm1841_vm0 = vmmov %vm1840_vm4  ;;  %v1370_v10 = vmov 3  }
 0x3c1   :  { %v1079_v37 = vpack.c.bf16 %v610_v34, %v576_v27  ;;  %v1103_v38 = vpack.c.bf16 %v828_v30, %v794_v33  ;;  %v803_v39 = vpop.permute.xlu1 %802  ;;  %v1342_v40 = vpop.permute.xlu0 %1341  ;;  %vm1842_vm1 = vmmov %vm1841_vm0  ;;  %1346 = vset.pattern.permute.xlu0 %v1370_v10 }
 0x3c2   :  { %v1344_v41 = vunpack.i.h.bf16 %v1342_v40  ;;  %v1343_v1 = vunpack.i.l.bf16 %v1342_v40  ;;  %vm1843_vm6 = vmmov %vm1841_vm0 }
 0x3c3   :  { %1081 = vmatpush1.bf16.msk.msra.mxu0 %vm1491_vm8, %v1079_v37  ;;  %1105 = vmatpush1.bf16.msk.msra.mxu1 %vm1491_vm8, %v1103_v38  ;;  %vm1844_vm8 = vcmask 588800   ;;  %v1007_v37 = vld [vmem:[%s1799_s0 + $0x10] sm:$0xf]  ;;  %v1008_v38 = vld [vmem:[%s1799_s0 + $0x18] sm:$0xf] }
 0x3c4   :  { %v589_v29 = vsel %vm1840_vm4, %v585_v23, %v1343_v1  ;;  %v807_v44 = vsel %vm1841_vm0, %v803_v39, %v1344_v41  ;;  %vm1845_vm7 = vmmov %vm1844_vm8 }
 0x3c5   :  { %v801_v47 = vpop.permute.xlu1 %800  ;;  %v583_v49 = vpop.permute.xlu0 %582  ;;  %991 = vmatprep.subr.msk.mxu0 %vm1496_vm9, %v589_v29  ;;  %1004 = vmatprep.subr.msk.mxu1 %vm1496_vm9, %v807_v44 }
 0x3c6   :  { %v806_v42 = vsel %vm1842_vm1, %v801_v47, %v803_v39  ;;  %v588_v46 = vsel %vm1843_vm6, %v583_v49, %v585_v23  ;;  %v723_v23 = vld [vmem:[%s1799_s0] sm:$0xf] }
 0x3c7   :  { %992 = vmatpush1.msk.msra.mxu0 %vm1518_vm11, %v588_v46  ;;  %1005 = vmatpush1.msk.msra.mxu1 %vm1518_vm11, %v806_v42 }
 0x3c8   :  { %993 = vmatmul.mubr.msk.f32.vlgmr.msra.gmra.mrb[2].mxu0 %vm1844_vm8, %v952_v45  ;;  %1006 = vmatmul.mubr.msk.f32.vlgmr.msra.gmra.mrb[2].mxu1 %vm1845_vm7, %v952_v45 }
 0x49b   :  { %v683_v43 = vpop.f32.mrb[2].mxu0  ;;  %v898_v50 = vpop.f32.mrb[2].mxu1 }
 0x49c   :  { %v685_v51 = vpop.f32.mrb[3].mxu0  ;;  %v900_v52 = vpop.f32.mrb[3].mxu1  ;;  %v692_v48 = vmul.f32 %v683_v43, %v683_v43  ;;  %v907_v53 = vmul.f32 %v898_v50, %v898_v50 }
 0x49d   :  { %v693_v3 = vmul.f32 %v685_v51, %v685_v51  ;;  %v688_v54 = vadd.f32 %v685_v51, %v683_v43  ;;  %v908_v55 = vmul.f32 %v900_v52, %v900_v52  ;;  %v903_v56 = vadd.f32 %v900_v52, %v898_v50 }
 0x49f   :  { %689 = vadd.xlane.f32.xlu0 %v688_v54  ;;  %v694_v57 = vadd.f32 %v693_v3, %v692_v48  ;;  %904 = vadd.xlane.f32.xlu1 %v903_v56  ;;  %v909_v0 = vadd.f32 %v908_v55, %v907_v53 }
 0x4a3   :  { %695 = vadd.xlane.f32.xlu0 %v694_v57 }
 0x4a7   :  { %910 = vadd.xlane.f32.xlu0 %v909_v0 }
 0x52c   :  { %v690_v58 = vpop.xlane.xlu0 %689  ;;  %v905_v60 = vpop.xlane.xlu1 %904 }
 0x52d   :  { %v691_v61 = vmul.f32 0.00390625, %v690_v58  ;;  %v906_v62 = vmul.f32 0.00390625, %v905_v60 }
 0x52f   :  { %v698_v59 = vmul.f32 %v691_v61, %v691_v61  ;;  %v913_v22 = vmul.f32 %v906_v62, %v906_v62 }
 0x530   :  { %v696_v63 = vpop.xlane.xlu0 %695 }
 0x531   :  { %v697_v4 = vmul.f32 0.00390625, %v696_v63 }
 0x533   :  { %v699_v6 = vsub.f32 %v697_v4, %v698_v59 }
 0x534   :  { %v911_v32 = vpop.xlane.xlu0 %910 }
 0x535   :  { %v700_v28 = vadd.f32 1e-05, %v699_v6  ;;  %v912_v7 = vmul.f32 0.00390625, %v911_v32 }
 0x537   :  { %1352 = vrsqrt.f32 %v700_v28  ;;  %v914_v8 = vsub.f32 %v912_v7, %v913_v22 }
 0x539   :  { %v915_v9 = vadd.f32 1e-05, %v914_v8 }
 0x53b   :  { %1354 = vrsqrt.f32 %v915_v9 }
 0x541   :  { %v1353_v35 = vpop.eup %1352 }
 0x542   :  { %v702_v11 = vmul.f32 %v1353_v35, %v1628_v2 }
 0x544   :  { %v703_v12 = vmul.f32 %v702_v11, %v691_v61 }
 0x545   :  { %v1355_v13 = vpop.eup %1354 }
 0x546   :  { %705 = vrot.lane.b32.xlu1 %v703_v12, %s1359_s22  ;;  %v917_v15 = vmul.f32 %v1355_v13, %v1628_v2 }
 0x548   :  { %v918_v31 = vmul.f32 %v917_v15, %v906_v62 }
 0x54a   :  { %711 = vperm.xlu1 %1345, %v702_v11   ;;  %920 = vrot.lane.b32.xlu0 %v918_v31, %s1359_s22 }
 0x54e   :  { %926 = vperm.xlu1 %1345, %v917_v15  }
 0x552   :  { %1347 = vset.pattern.permute.xlu1 %v1370_v10 }
 0x5b8   :  { %v706_v16 = vpop.permute.xlu1 %705 }
 0x5b9   :  { %v708_v36 = vsub.f32 %v1628_v2, %v706_v16 }
 0x5bb   :  { %718 = vperm.xlu0 %1346, %v708_v36  }
 0x5bc   :  { %v921_v17 = vpop.permute.xlu0 %920 }
 0x5bd   :  { %v923_v18 = vsub.f32 %v1628_v2, %v921_v17 }
 0x5bf   :  { %933 = vperm.xlu1 %1347, %v923_v18  }
 0x5c9   :  { %v712_v19 = vpop.permute.xlu1 %711 }
 0x5ca   :  { %v714_v20 = vmul.f32 %v712_v19, %v683_v43  ;;  %v715_v5 = vmul.f32 %v712_v19, %v685_v51 }
 0x5cd   :  { %v927_v21 = vpop.permute.xlu1 %926 }
 0x5ce   :  { %v929_v33 = vmul.f32 %v927_v21, %v898_v50  ;;  %v930_v34 = vmul.f32 %v927_v21, %v900_v52 }
 0x63a   :  { %v719_v25 = vpop.permute.xlu0 %718 }
 0x63b   :  { %v721_v26 = vadd.f32 %v719_v25, %v714_v20  ;;  %v722_v27 = vadd.f32 %v719_v25, %v715_v5 }
 0x63d   :  { %v725_v30 = vadd.f32 %v723_v23, %v721_v26  ;;  %v726_v2 = vadd.f32 %v724_v24, %v722_v27 }
 0x63e   :  { %v934_v39 = vpop.permute.xlu1 %933 }
 0x63f   :  { %v729_v40 = vcombine.low %v725_v30, %v726_v2  ;;  %v936_v41 = vadd.f32 %v934_v39, %v929_v33  ;;  %v937_v1 = vadd.f32 %v934_v39, %v930_v34 }
 0x641   :  { %731 = vst [vmem:[%s1802_s3] sm:$0xff] %v729_v40  ;;  %v940_v29 = vadd.f32 %v1007_v37, %v936_v41  ;;  %v941_v44 = vadd.f32 %v1008_v38, %v937_v1 }
 0x643   :  { %v944_v45 = vcombine.low %v940_v29, %v941_v44 }
 0x645   :  { %1009 = vst [vmem:[%s1802_s3 + $0x8] sm:$0xff] %v944_v45 }

</bundles_post_ra>
